<compile_context>
chip_gen: v7x
topology: tpu7x:2x2x1
jax: 0.10.0
libtpu: 0.0.40
codegen_flags: <defaults>
</compile_context>

<pallas_src>
import functools

import jax
import jax.numpy as jnp
from jax import lax
from jax.experimental import pallas as pl
from jax.experimental.pallas import tpu as pltpu


# ----------------------------------------------------------------------------
# Small helpers
# ----------------------------------------------------------------------------
def _round_up(x, m):
    return ((x + m - 1) // m) * m


def _vmem_limit_bytes():
    """Generation-aware scoped-VMEM budget: ~75% of physical, capped at 100 MiB.

    v5e/v6e (128 MiB) -> 96 MiB, v7x (64 MiB) -> 48 MiB.  Falls back to the
    conservative v7x budget if the query is unavailable.
    """
    cap = 64 * 1024 * 1024
    try:
        cap = int(pltpu.get_tpu_info().vmem_capacity_bytes)
    except Exception:
        pass
    return int(min(cap * 3 // 4, 100 * 1024 * 1024))


def _pick_row_tile(m, target):
    """Largest divisor of m that is a multiple of 8 and <= target (or m)."""
    target = max(8, (min(m, int(target)) // 8) * 8)
    for t in range(target, 7, -8):
        if m % t == 0:
            return t
    return m


def _pick_divisor(m, target):
    """Largest divisor of m that is <= target."""
    t = min(m, max(1, int(target)))
    while m % t:
        t -= 1
    return t


# ----------------------------------------------------------------------------
# Kernel A: tiled matmul(s) + per-tile BN partial stats (patches / 1x1 convs)
# ----------------------------------------------------------------------------
def _matmul_stats_kernel(*refs, n_pairs):
    ins, outs = refs[:2 * n_pairs], refs[2 * n_pairs:]
    for i in range(n_pairs):
        p_ref, w_ref = ins[2 * i], ins[2 * i + 1]
        y_ref, s_ref, q_ref = outs[3 * i:3 * i + 3]
        y = jnp.dot(p_ref[...], w_ref[...], preferred_element_type=jnp.float32)
        y_ref[...] = y.astype(y_ref.dtype)
        # Per-tile partial sums (lane-preserving sublane reduce; grid stays
        # fully "parallel", partials are reduced in the wrapper).
        s_ref[0] = jnp.sum(y, axis=0, keepdims=True)
        q_ref[0] = jnp.sum(y * y, axis=0, keepdims=True)


def matmul_stats(pairs, *, tile_m, vmem_limit):
    """pairs: [(p [M,K] bf16, w [K,C] bf16)] -> [(y [M,C] bf16, sum, sq [1,C])].

    All pairs share one grid pass over M (fuses e.g. the 1x1 projection
    shortcut with conv1's patches matmul into a single pallas_call).
    """
    m = pairs[0][0].shape[0]
    w_bytes = sum(int(w.size) * 2 for _, w in pairs)
    row_bytes = sum((p.shape[1] + w.shape[1]) * 2 for p, w in pairs)
    budget = max(vmem_limit - 2 * w_bytes - (2 << 20), 1 << 20)
    tm = _pick_row_tile(m, min(int(tile_m), budget // (2 * row_bytes)))
    n_tiles = m // tm

    args, in_specs, out_shapes, out_specs = [], [], [], []
    for p, w in pairs:
        k, c = p.shape[1], w.shape[1]
        args += [p, w]
        in_specs += [pl.BlockSpec((tm, k), lambda i: (i, 0)),
                     pl.BlockSpec((k, c), lambda i: (0, 0))]
    for p, w in pairs:
        c = w.shape[1]
        out_shapes += [jax.ShapeDtypeStruct((m, c), jnp.bfloat16),
                       jax.ShapeDtypeStruct((n_tiles, 1, c), jnp.float32),
                       jax.ShapeDtypeStruct((n_tiles, 1, c), jnp.float32)]
        out_specs += [pl.BlockSpec((tm, c), lambda i: (i, 0)),
                      pl.BlockSpec((1, 1, c), lambda i: (i, 0, 0)),
                      pl.BlockSpec((1, 1, c), lambda i: (i, 0, 0))]

    flops = int(sum(2 * m * p.shape[1] * w.shape[1] for p, w in pairs))
    bytes_acc = int(sum(p.size * 2 + w.size * 2 + m * w.shape[1] * 2
                        + 2 * n_tiles * w.shape[1] * 4 for p, w in pairs))
    outs = pl.pallas_call(
        functools.partial(_matmul_stats_kernel, n_pairs=len(pairs)),
        out_shape=tuple(out_shapes),
        grid=(n_tiles,),
        in_specs=in_specs,
        out_specs=tuple(out_specs),
        compiler_params=pltpu.CompilerParams(
            dimension_semantics=("parallel",), vmem_limit_bytes=vmem_limit),
        cost_estimate=pl.CostEstimate(flops=flops, transcendentals=0,
                                      bytes_accessed=bytes_acc),
    )(*args)
    return [(outs[3 * i],
             jnp.sum(outs[3 * i + 1], axis=0),
             jnp.sum(outs[3 * i + 2], axis=0)) for i in range(len(pairs))]


# ----------------------------------------------------------------------------
# Kernel B: 3x3 stride-1 conv without materialized im2col + BN partial stats
# ----------------------------------------------------------------------------
def _conv3x3_s1_kernel(x_ref, w_ref, mask_ref, y_ref, s_ref, q_ref,
                       xf_ref, acc_ref, *, wp, rows):
    # x_ref : [1, L, Cin] bf16 -- zero-padded image, rows flattened as h*wp + w.
    # w_ref : [9, Cin, C]  bf16 -- tap-major weights.
    # y_ref : [1, rows, C] bf16 -- conv output in "slab" layout (rows with
    #                              col % wp >= wo are junk, dropped downstream).
    # s/q   : [1, 1, C]    f32  -- masked per-image sum / sum-of-squares.
    # Stage the image once in f32 (aligned copy); the 9 shifted-window reads
    # below slice it at arbitrary sublane offsets (cheap for 32-bit) and are
    # cast back to bf16 right before hitting the MXU.
    xf_ref[...] = x_ref[0].astype(jnp.float32)
    first = True
    for kh in range(3):
        for kw in range(3):
            off = kh * wp + kw
            lhs = xf_ref[off:off + rows, :].astype(jnp.bfloat16)
            contrib = jnp.dot(lhs, w_ref[kh * 3 + kw],
                              preferred_element_type=jnp.float32)
            if first:
                acc_ref[...] = contrib
                first = False
            else:
                acc_ref[...] += contrib
    acc = acc_ref[...]
    y_ref[0] = acc.astype(y_ref.dtype)
    valid = mask_ref[0]                                   # [rows, 1] f32
    s_ref[0] = jnp.sum(acc * valid, axis=0, keepdims=True)
    q_ref[0] = jnp.sum(acc * acc * valid, axis=0, keepdims=True)


def conv3x3_s1_stats(x_pad_nhwc, w_taps, *, vmem_limit):
    """3x3 stride-1 conv (pad already applied) + BN batch-stat partial sums.

    x_pad_nhwc: [N, Hp, Wp, Cin] bf16.  w_taps: [9, Cin, C] bf16.
    Returns y [N, Ho*Wp, C] bf16 in slab layout plus sum/sumsq [1, C] f32.
    """
    n, hp, wp, cin = x_pad_nhwc.shape
    c = w_taps.shape[-1]
    ho, wo = hp - 2, wp - 2
    rows = ho * wp
    # Flatten spatial dims per image and add slack so the last tap's window
    # (offset 2*wp + 2) stays in bounds.
    x_flat = jnp.pad(x_pad_nhwc.reshape(n, hp * wp, cin), ((0, 0), (0, 8), (0, 0)))
    lp = x_flat.shape[1]
    col = jnp.arange(rows, dtype=jnp.int32) % wp
    mask = (col < wo).astype(jnp.float32).reshape(1, rows, 1)

    flops = int(2 * n * rows * 9 * cin * c)
    bytes_acc = int(x_flat.size * 2 + w_taps.size * 2
                    + n * rows * c * 2 + 2 * n * c * 4)
    y, s, q = pl.pallas_call(
        functools.partial(_conv3x3_s1_kernel, wp=wp, rows=rows),
        out_shape=(
            jax.ShapeDtypeStruct((n, rows, c), jnp.bfloat16),
            jax.ShapeDtypeStruct((n, 1, c), jnp.float32),
            jax.ShapeDtypeStruct((n, 1, c), jnp.float32),
        ),
        grid=(n,),
        in_specs=[
            pl.BlockSpec((1, lp, cin), lambda i: (i, 0, 0)),
            pl.BlockSpec((9, cin, c), lambda i: (0, 0, 0)),
            pl.BlockSpec((1, rows, 1), lambda i: (0, 0, 0)),
        ],
        out_specs=(
            pl.BlockSpec((1, rows, c), lambda i: (i, 0, 0)),
            pl.BlockSpec((1, 1, c), lambda i: (i, 0, 0)),
            pl.BlockSpec((1, 1, c), lambda i: (i, 0, 0)),
        ),
        scratch_shapes=[pltpu.VMEM((lp, cin), jnp.float32),
                        pltpu.VMEM((rows, c), jnp.float32)],
        compiler_params=pltpu.CompilerParams(
            dimension_semantics=("parallel",), vmem_limit_bytes=vmem_limit),
        cost_estimate=pl.CostEstimate(flops=flops, transcendentals=0,
                                      bytes_accessed=bytes_acc),
    )(x_flat, w_taps, mask)
    return y, jnp.sum(s, axis=0), jnp.sum(q, axis=0)


# ----------------------------------------------------------------------------
# Pass 2: folded BN (+ optional residual / fused shortcut-BN) + optional ReLU
# ----------------------------------------------------------------------------
def _bn_act_kernel(y_ref, sc_ref, sh_ref, o_ref, *, wo, relu):
    out = y_ref[:, :wo, :].astype(jnp.float32) * sc_ref[...] + sh_ref[...]
    if relu:
        out = jnp.maximum(out, 0.0)
    o_ref[...] = out.astype(o_ref.dtype)


def _bn_add_act_kernel(y_ref, sc_ref, sh_ref, r_ref, o_ref, *, wo, relu):
    out = (y_ref[:, :wo, :].astype(jnp.float32) * sc_ref[...] + sh_ref[...]
           + r_ref[...].astype(jnp.float32))
    if relu:
        out = jnp.maximum(out, 0.0)
    o_ref[...] = out.astype(o_ref.dtype)


def _bn_add_bn_act_kernel(y_ref, sc_ref, sh_ref, ry_ref, rsc_ref, rsh_ref,
                          o_ref, *, wo, relu):
    out = (y_ref[:, :wo, :].astype(jnp.float32) * sc_ref[...] + sh_ref[...]
           + ry_ref[...].astype(jnp.float32) * rsc_ref[...] + rsh_ref[...])
    if relu:
        out = jnp.maximum(out, 0.0)
    o_ref[...] = out.astype(o_ref.dtype)


def bn_apply(y3, scale, shift, *, wo, relu, out_dtype,
             residual=None, res_scale_shift=None, vmem_limit):
    """y3: [R, Wy, C] (columns >= wo are junk).  Output: [R, wo, C]."""
    r, wy, c = y3.shape
    per_row = (wy + 2 * wo) * c * 4
    cap = max(1, (vmem_limit // 2 - (1 << 20)) // (2 * per_row))
    t = _pick_divisor(r, cap)
    n_tiles = r // t

    y_spec = pl.BlockSpec((t, wy, c), lambda i: (i, 0, 0))
    o_spec = pl.BlockSpec((t, wo, c), lambda i: (i, 0, 0))
    vec = pl.BlockSpec((1, 1, c), lambda i: (0, 0, 0))

    args = [y3, scale, shift]
    in_specs = [y_spec, vec, vec]
    if residual is None:
        kern = functools.partial(_bn_act_kernel, wo=wo, relu=relu)
    elif res_scale_shift is None:
        kern = functools.partial(_bn_add_act_kernel, wo=wo, relu=relu)
        args.append(residual)
        in_specs.append(o_spec)
    else:
        rsc, rsh = res_scale_shift
        kern = functools.partial(_bn_add_bn_act_kernel, wo=wo, relu=relu)
        args += [residual, rsc, rsh]
        in_specs += [o_spec, vec, vec]

    out_size = r * wo * c
    bytes_acc = int(sum(int(a.size) * a.dtype.itemsize for a in args)
                    + out_size * jnp.dtype(out_dtype).itemsize)
    return pl.pallas_call(
        kern,
        out_shape=jax.ShapeDtypeStruct((r, wo, c), out_dtype),
        grid=(n_tiles,),
        in_specs=in_specs,
        out_specs=o_spec,
        compiler_params=pltpu.CompilerParams(
            dimension_semantics=("parallel",), vmem_limit_bytes=vmem_limit),
        cost_estimate=pl.CostEstimate(flops=int(8 * out_size), transcendentals=0,
                                      bytes_accessed=bytes_acc),
    )(*args)


# ----------------------------------------------------------------------------
# JAX glue: BN folding, weight repacking, im2col fallback, block wiring
# ----------------------------------------------------------------------------
def _fold_bn(total_sum, total_sq, gamma, beta, m, eps):
    """Fold batch-stat BN into per-channel scale/shift, shaped [1, 1, C]."""
    inv_m = 1.0 / float(m)
    mean = total_sum * inv_m
    var = jnp.maximum(total_sq * inv_m - mean * mean, 0.0)
    scale = gamma * lax.rsqrt(var + eps)
    shift = beta - mean * scale
    c = scale.shape[-1]
    return scale.reshape(1, 1, c), shift.reshape(1, 1, c)


def _pad_gb(g, b, c):
    gp = jnp.pad(g.astype(jnp.float32).reshape(1, -1), ((0, 0), (0, c - g.shape[0])))
    bp = jnp.pad(b.astype(jnp.float32).reshape(1, -1), ((0, 0), (0, c - b.shape[0])))
    return gp, bp


def _repack_w3x3(w_oihw, cin_pad, cout_pad):
    cout, cin, kh, kw = w_oihw.shape
    w = jnp.transpose(w_oihw.astype(jnp.float32), (2, 3, 1, 0))   # [3,3,ci,co]
    w = jnp.pad(w, ((0, 0), (0, 0), (0, cin_pad - cin), (0, cout_pad - cout)))
    return w.reshape(kh * kw, cin_pad, cout_pad).astype(jnp.bfloat16)


def _repack_w3x3_flat(w_oihw, cin_pad, cout_pad):
    return _repack_w3x3(w_oihw, cin_pad, cout_pad).reshape(9 * cin_pad, cout_pad)


def _repack_w1x1(w_oihw, cout_pad):
    cout = w_oihw.shape[0]
    w = jnp.transpose(w_oihw[:, :, 0, 0].astype(jnp.float32), (1, 0))  # [ci,co]
    return jnp.pad(w, ((0, 0), (0, cout_pad - cout))).astype(jnp.bfloat16)


def _im2col(x_nhwc, ksize, stride, padding):
    n, h, w, c = x_nhwc.shape
    xp = jnp.pad(x_nhwc, ((0, 0), (padding, padding), (padding, padding), (0, 0)))
    ho = (h + 2 * padding - ksize) // stride + 1
    wo = (w + 2 * padding - ksize) // stride + 1
    cols = []
    for kh in range(ksize):
        for kw in range(ksize):
            cols.append(xp[:, kh:kh + stride * ho:stride,
                           kw:kw + stride * wo:stride, :])
    patches = jnp.stack(cols, axis=3)
    return patches.reshape(n * ho * wo, ksize * ksize * c)


def basic_block_forward(x_nchw, params, in_planes, planes, stride, *,
                        eps=1e-5, tile_m=1024):
    """BasicBlock.forward: relu(bn1(conv1(x))); bn2(conv2(.)) + shortcut(x); relu.

    BatchNorm uses batch statistics (PyTorch training mode).
    """
    vmem = _vmem_limit_bytes()
    # TODO(synk): a full NHWC network would drop these boundary transposes;
    # they exist only to match the PyTorch NCHW interface.
    x_nhwc = jnp.transpose(x_nchw, (0, 2, 3, 1)).astype(jnp.float32)
    n, h, w, _ = x_nhwc.shape
    ho = (h - 1) // stride + 1
    wo = (w - 1) // stride + 1
    m = n * ho * wo
    cp = _round_up(planes, 128)                       # lane-dense channel axis
    has_proj = (stride != 1) or (in_planes != planes)

    g1, b1 = _pad_gb(params["g1"], params["b1"], cp)
    g2, b2 = _pad_gb(params["g2"], params["b2"], cp)

    # ---- conv1 (3x3, stride s, pad 1) and the projection-shortcut matmul ----
    proj = None
    if stride == 1:
        xp = jnp.pad(x_nhwc, ((0, 0), (1, 1), (1, 1), (0, 0))).astype(jnp.bfloat16)
        w1 = _repack_w3x3(params["w1"], in_planes, cp)
        y1, s1, q1 = conv3x3_s1_stats(xp, w1, vmem_limit=vmem)
        y1_3 = y1.reshape(n * ho, wo + 2, cp)         # slab layout
        if has_proj:                                  # 1x1 projection, stride 1
            xs = x_nhwc.reshape(m, in_planes).astype(jnp.bfloat16)
            ws = _repack_w1x1(params["ws"], cp)
            (ys, ss, qs), = matmul_stats([(xs, ws)], tile_m=tile_m, vmem_limit=vmem)
            proj = (ys, ss, qs)
    else:
        # Strided conv1: im2col patches matmul fused with the 1x1 projection
        # shortcut (same M grid) in a single pallas_call.
        patches1 = _im2col(x_nhwc, 3, stride, 1).astype(jnp.bfloat16)
        w1 = _repack_w3x3_flat(params["w1"], in_planes, cp)
        xs = x_nhwc[:, ::stride, ::stride, :].reshape(m, in_planes).astype(jnp.bfloat16)
        ws = _repack_w1x1(params["ws"], cp)
        res = matmul_stats([(patches1, w1), (xs, ws)], tile_m=tile_m, vmem_limit=vmem)
        (y1, s1, q1), proj = res[0], res[1]
        y1_3 = y1.reshape(n * ho, wo, cp)

    scale1, shift1 = _fold_bn(s1, q1, g1, b1, m, eps)
    out1 = bn_apply(y1_3, scale1, shift1, wo=wo, relu=True,
                    out_dtype=jnp.bfloat16, vmem_limit=vmem)   # [n*ho, wo, cp]

    # ---- residual term ----
    if has_proj:
        ys, ss, qs = proj
        gs, bs = _pad_gb(params["gs"], params["bs"], cp)
        res_ss = _fold_bn(ss, qs, gs, bs, m, eps)
        residual = ys.reshape(n * ho, wo, cp)         # raw 1x1 conv output (bf16)
    else:
        residual = jnp.pad(x_nhwc.reshape(m, in_planes),
                           ((0, 0), (0, cp - in_planes))).astype(jnp.bfloat16)
        residual = residual.reshape(n * ho, wo, cp)
        res_ss = None

    # ---- conv2 (3x3, stride 1, pad 1) + bn2 + shortcut add + relu ----
    o1p = jnp.pad(out1.reshape(n, ho, wo, cp), ((0, 0), (1, 1), (1, 1), (0, 0)))
    w2 = _repack_w3x3(params["w2"], cp, cp)
    y2, s2, q2 = conv3x3_s1_stats(o1p, w2, vmem_limit=vmem)
    y2_3 = y2.reshape(n * ho, wo + 2, cp)
    scale2, shift2 = _fold_bn(s2, q2, g2, b2, m, eps)

    out2 = bn_apply(y2_3, scale2, shift2, wo=wo, relu=True, out_dtype=jnp.float32,
                    residual=residual, res_scale_shift=res_ss, vmem_limit=vmem)

    out_nhwc = out2.reshape(n, ho, wo, cp)[..., :planes]
    return jnp.transpose(out_nhwc, (0, 3, 1, 2))      # back to NCHW


# ----------------------------------------------------------------------------
# Pure-JAX f32 reference and parameter init
# ----------------------------------------------------------------------------
def reference_forward(x_nchw, params, in_planes, planes, stride, eps=1e-5):
    def conv(x, wt, s, pad):
        return lax.conv_general_dilated(
            x, wt, (s, s), ((pad, pad), (pad, pad)),
            dimension_numbers=("NCHW", "OIHW", "NCHW"))

    def bn(x, g, b):
        mu = jnp.mean(x, axis=(0, 2, 3), keepdims=True)
        var = jnp.mean((x - mu) ** 2, axis=(0, 2, 3), keepdims=True)
        return ((x - mu) * lax.rsqrt(var + eps) * g.reshape(1, -1, 1, 1)
                + b.reshape(1, -1, 1, 1))

    out = jax.nn.relu(bn(conv(x_nchw, params["w1"], stride, 1),
                         params["g1"], params["b1"]))
    out = bn(conv(out, params["w2"], 1, 1), params["g2"], params["b2"])
    if stride != 1 or in_planes != planes:
        sc = bn(conv(x_nchw, params["ws"], stride, 0), params["gs"], params["bs"])
    else:
        sc = x_nchw
    return jax.nn.relu(out + sc)


def init_basic_block_params(key, in_planes, planes, stride):
    ks = jax.random.split(key, 9)
    p = {
        "w1": 0.1 * jax.random.normal(ks[0], (planes, in_planes, 3, 3), jnp.float32),
        "g1": 1.0 + 0.1 * jax.random.normal(ks[1], (planes,), jnp.float32),
        "b1": 0.1 * jax.random.normal(ks[2], (planes,), jnp.float32),
        "w2": 0.1 * jax.random.normal(ks[3], (planes, planes, 3, 3), jnp.float32),
        "g2": 1.0 + 0.1 * jax.random.normal(ks[4], (planes,), jnp.float32),
        "b2": 0.1 * jax.random.normal(ks[5], (planes,), jnp.float32),
    }
    if stride != 1 or in_planes != planes:
        p["ws"] = 0.1 * jax.random.normal(ks[6], (planes, in_planes, 1, 1), jnp.float32)
        p["gs"] = 1.0 + 0.1 * jax.random.normal(ks[7], (planes,), jnp.float32)
        p["bs"] = 0.1 * jax.random.normal(ks[8], (planes,), jnp.float32)
    return p


if __name__ == "__main__":
    key = jax.random.PRNGKey(0)
    kx, kp1, kp2 = jax.random.split(key, 3)

    # Input consistent with an NCHW Conv2d module: [N, C, H, W]
    x = jax.random.normal(kx, (2, 4, 16, 16), jnp.float32)
    fwd = jax.jit(basic_block_forward, static_argnums=(2, 3, 4))

    # Case 1: downsampling block with projection shortcut (stride=2, 4 -> 8).
    params_proj = init_basic_block_params(kp1, in_planes=4, planes=8, stride=2)
    y_proj = fwd(x, params_proj, 4, 8, 2)
    jax.block_until_ready(y_proj)
    ref_proj = reference_forward(x, params_proj, 4, 8, 2)
    assert y_proj.shape == (2, 8, 8, 8)
    assert bool(jnp.all(jnp.isfinite(y_proj)))
    assert bool(jnp.all(y_proj >= 0.0))
    err = float(jnp.max(jnp.abs(y_proj - ref_proj)))
    assert err < 1e-1, f"projection block max |err| = {err}"

    # Case 2: identity-shortcut block (stride=1, 4 -> 4 planes).
    params_id = init_basic_block_params(kp2, in_planes=4, planes=4, stride=1)
    y_id = fwd(x, params_id, 4, 4, 1)
    jax.block_until_ready(y_id)
    ref_id = reference_forward(x, params_id, 4, 4, 1)
    assert y_id.shape == (2, 4, 16, 16)
    assert bool(jnp.all(jnp.isfinite(y_id)))
    assert bool(jnp.all(y_id >= 0.0))
    err = float(jnp.max(jnp.abs(y_id - ref_id)))
    assert err < 1e-1, f"identity block max |err| = {err}"

    print("KERNEL_OK")
</pallas_src>

<mosaic_0001>
module attributes {stable_mosaic.version = 11 : i64} {
  func.func @_matmul_stats_kernel(%arg0: i32, %arg1: memref<128x36xbf16, #tpu.memory_space<vmem>>, %arg2: memref<36x128xbf16, #tpu.memory_space<vmem>>, %arg3: memref<128x4xbf16, #tpu.memory_space<vmem>>, %arg4: memref<4x128xbf16, #tpu.memory_space<vmem>>, %arg5: memref<128x128xbf16, #tpu.memory_space<vmem>>, %arg6: memref<1x1x128xf32, #tpu.memory_space<vmem>>, %arg7: memref<1x1x128xf32, #tpu.memory_space<vmem>>, %arg8: memref<128x128xbf16, #tpu.memory_space<vmem>>, %arg9: memref<1x1x128xf32, #tpu.memory_space<vmem>>, %arg10: memref<1x1x128xf32, #tpu.memory_space<vmem>>) attributes {dimension_semantics = [#tpu.dimension_semantics<parallel>], iteration_bounds = array<i64: 1>, scalar_prefetch = 0 : i64, scratch_operands = 0 : i64, tpu.core_type = #tpu.core_type<tc>, window_params = [{transform_indices = @transform_0, window_bounds = array<i64: 128, 36>}, {pipeline_mode = #tpu.pipeline_mode<synchronous>, transform_indices = @transform_1, window_bounds = array<i64: 36, 128>}, {transform_indices = @transform_2, window_bounds = array<i64: 128, 4>}, {pipeline_mode = #tpu.pipeline_mode<synchronous>, transform_indices = @transform_3, window_bounds = array<i64: 4, 128>}, {transform_indices = @transform_4, window_bounds = array<i64: 128, 128>}, {transform_indices = @transform_5, window_bounds = array<i64: 1, 1, 128>}, {transform_indices = @transform_6, window_bounds = array<i64: 1, 1, 128>}, {transform_indices = @transform_7, window_bounds = array<i64: 128, 128>}, {transform_indices = @transform_8, window_bounds = array<i64: 1, 1, 128>}, {transform_indices = @transform_9, window_bounds = array<i64: 1, 1, 128>}]} {
    %c0 = arith.constant 0 : index
    %c0_0 = arith.constant 0 : index
    %0 = vector.load %arg1[%c0, %c0_0] : memref<128x36xbf16, #tpu.memory_space<vmem>>, vector<128x36xbf16>
    %c0_1 = arith.constant 0 : index
    %c0_2 = arith.constant 0 : index
    %1 = vector.load %arg2[%c0_1, %c0_2] : memref<36x128xbf16, #tpu.memory_space<vmem>>, vector<36x128xbf16>
    %cst = arith.constant dense<0.000000e+00> : vector<128x128xf32>
    %2 = tpu.matmul %0, %1, %cst {dimension_numbers = #tpu.dot_dimension_numbers<[1], [0], [0], [1], [0, 0, 1, 1], [], []>} : vector<128x36xbf16>, vector<36x128xbf16>, vector<128x128xf32> -> vector<128x128xf32>
    %3 = arith.truncf %2 : vector<128x128xf32> to vector<128x128xbf16>
    %c0_3 = arith.constant 0 : index
    %c0_4 = arith.constant 0 : index
    %4 = vector.load %arg5[%c0_3, %c0_4] : memref<128x128xbf16, #tpu.memory_space<vmem>>, vector<128x128xbf16>
    tpu.vector_store %arg5[%c0_3, %c0_4], %3 {strides = array<i32>} : memref<128x128xbf16, #tpu.memory_space<vmem>>, vector<128x128xbf16>,
    %cst_5 = arith.constant dense<0.000000e+00> : vector<128xf32>
    %5 = vector.multi_reduction <add>, %2, %cst_5 [0] : vector<128x128xf32> to vector<128xf32>
    %6 = vector.shape_cast %5 : vector<128xf32> to vector<1x128xf32>
    %c0_6 = arith.constant 0 : index
    %c0_7 = arith.constant 0 : index
    %c0_8 = arith.constant 0 : index
    %7 = vector.load %arg6[%c0_6, %c0_7, %c0_8] : memref<1x1x128xf32, #tpu.memory_space<vmem>>, vector<1x1x128xf32>
    %8 = vector.shape_cast %7 : vector<1x1x128xf32> to vector<1x128xf32>
    %9 = vector.shape_cast %6 : vector<1x128xf32> to vector<1x1x128xf32>
    tpu.vector_store %arg6[%c0_6, %c0_7, %c0_8], %9 {strides = array<i32>} : memref<1x1x128xf32, #tpu.memory_space<vmem>>, vector<1x1x128xf32>,
    %10 = arith.mulf %2, %2 : vector<128x128xf32>
    %cst_9 = arith.constant dense<0.000000e+00> : vector<128xf32>
    %11 = vector.multi_reduction <add>, %10, %cst_9 [0] : vector<128x128xf32> to vector<128xf32>
    %12 = vector.shape_cast %11 : vector<128xf32> to vector<1x128xf32>
    %c0_10 = arith.constant 0 : index
    %c0_11 = arith.constant 0 : index
    %c0_12 = arith.constant 0 : index
    %13 = vector.load %arg7[%c0_10, %c0_11, %c0_12] : memref<1x1x128xf32, #tpu.memory_space<vmem>>, vector<1x1x128xf32>
    %14 = vector.shape_cast %13 : vector<1x1x128xf32> to vector<1x128xf32>
    %15 = vector.shape_cast %12 : vector<1x128xf32> to vector<1x1x128xf32>
    tpu.vector_store %arg7[%c0_10, %c0_11, %c0_12], %15 {strides = array<i32>} : memref<1x1x128xf32, #tpu.memory_space<vmem>>, vector<1x1x128xf32>,
    %c0_13 = arith.constant 0 : index
    %c0_14 = arith.constant 0 : index
    %16 = vector.load %arg3[%c0_13, %c0_14] : memref<128x4xbf16, #tpu.memory_space<vmem>>, vector<128x4xbf16>
    %c0_15 = arith.constant 0 : index
    %c0_16 = arith.constant 0 : index
    %17 = vector.load %arg4[%c0_15, %c0_16] : memref<4x128xbf16, #tpu.memory_space<vmem>>, vector<4x128xbf16>
    %cst_17 = arith.constant dense<0.000000e+00> : vector<128x128xf32>
    %18 = tpu.matmul %16, %17, %cst_17 {dimension_numbers = #tpu.dot_dimension_numbers<[1], [0], [0], [1], [0, 0, 1, 1], [], []>} : vector<128x4xbf16>, vector<4x128xbf16>, vector<128x128xf32> -> vector<128x128xf32>
    %19 = arith.truncf %18 : vector<128x128xf32> to vector<128x128xbf16>
    %c0_18 = arith.constant 0 : index
    %c0_19 = arith.constant 0 : index
    %20 = vector.load %arg8[%c0_18, %c0_19] : memref<128x128xbf16, #tpu.memory_space<vmem>>, vector<128x128xbf16>
    tpu.vector_store %arg8[%c0_18, %c0_19], %19 {strides = array<i32>} : memref<128x128xbf16, #tpu.memory_space<vmem>>, vector<128x128xbf16>,
    %cst_20 = arith.constant dense<0.000000e+00> : vector<128xf32>
    %21 = vector.multi_reduction <add>, %18, %cst_20 [0] : vector<128x128xf32> to vector<128xf32>
    %22 = vector.shape_cast %21 : vector<128xf32> to vector<1x128xf32>
    %c0_21 = arith.constant 0 : index
    %c0_22 = arith.constant 0 : index
    %c0_23 = arith.constant 0 : index
    %23 = vector.load %arg9[%c0_21, %c0_22, %c0_23] : memref<1x1x128xf32, #tpu.memory_space<vmem>>, vector<1x1x128xf32>
    %24 = vector.shape_cast %23 : vector<1x1x128xf32> to vector<1x128xf32>
    %25 = vector.shape_cast %22 : vector<1x128xf32> to vector<1x1x128xf32>
    tpu.vector_store %arg9[%c0_21, %c0_22, %c0_23], %25 {strides = array<i32>} : memref<1x1x128xf32, #tpu.memory_space<vmem>>, vector<1x1x128xf32>,
    %26 = arith.mulf %18, %18 : vector<128x128xf32>
    %cst_24 = arith.constant dense<0.000000e+00> : vector<128xf32>
    %27 = vector.multi_reduction <add>, %26, %cst_24 [0] : vector<128x128xf32> to vector<128xf32>
    %28 = vector.shape_cast %27 : vector<128xf32> to vector<1x128xf32>
    %c0_25 = arith.constant 0 : index
    %c0_26 = arith.constant 0 : index
    %c0_27 = arith.constant 0 : index
    %29 = vector.load %arg10[%c0_25, %c0_26, %c0_27] : memref<1x1x128xf32, #tpu.memory_space<vmem>>, vector<1x1x128xf32>
    %30 = vector.shape_cast %29 : vector<1x1x128xf32> to vector<1x128xf32>
    %31 = vector.shape_cast %28 : vector<1x128xf32> to vector<1x1x128xf32>
    tpu.vector_store %arg10[%c0_25, %c0_26, %c0_27], %31 {strides = array<i32>} : memref<1x1x128xf32, #tpu.memory_space<vmem>>, vector<1x1x128xf32>,
    return
  }
  func.func @transform_0(%arg0: i32) -> (i32, i32) {
    %c0_i32 = arith.constant 0 : i32
    %c0_i32_0 = arith.constant 0 : i32
    return %arg0, %c0_i32 : i32, i32
  }
  func.func @transform_1(%arg0: i32) -> (i32, i32) {
    %c0_i32 = arith.constant 0 : i32
    %c0_i32_0 = arith.constant 0 : i32
    %c0_i32_1 = arith.constant 0 : i32
    return %c0_i32, %c0_i32_0 : i32, i32
  }
  func.func @transform_2(%arg0: i32) -> (i32, i32) {
    %c0_i32 = arith.constant 0 : i32
    %c0_i32_0 = arith.constant 0 : i32
    return %arg0, %c0_i32 : i32, i32
  }
  func.func @transform_3(%arg0: i32) -> (i32, i32) {
    %c0_i32 = arith.constant 0 : i32
    %c0_i32_0 = arith.constant 0 : i32
    %c0_i32_1 = arith.constant 0 : i32
    return %c0_i32, %c0_i32_0 : i32, i32
  }
  func.func @transform_4(%arg0: i32) -> (i32, i32) {
    %c0_i32 = arith.constant 0 : i32
    %c0_i32_0 = arith.constant 0 : i32
    return %arg0, %c0_i32 : i32, i32
  }
  func.func @transform_5(%arg0: i32) -> (i32, i32, i32) {
    %c0_i32 = arith.constant 0 : i32
    %c0_i32_0 = arith.constant 0 : i32
    %c0_i32_1 = arith.constant 0 : i32
    return %arg0, %c0_i32, %c0_i32_0 : i32, i32, i32
  }
  func.func @transform_6(%arg0: i32) -> (i32, i32, i32) {
    %c0_i32 = arith.constant 0 : i32
    %c0_i32_0 = arith.constant 0 : i32
    %c0_i32_1 = arith.constant 0 : i32
    return %arg0, %c0_i32, %c0_i32_0 : i32, i32, i32
  }
  func.func @transform_7(%arg0: i32) -> (i32, i32) {
    %c0_i32 = arith.constant 0 : i32
    %c0_i32_0 = arith.constant 0 : i32
    return %arg0, %c0_i32 : i32, i32
  }
  func.func @transform_8(%arg0: i32) -> (i32, i32, i32) {
    %c0_i32 = arith.constant 0 : i32
    %c0_i32_0 = arith.constant 0 : i32
    %c0_i32_1 = arith.constant 0 : i32
    return %arg0, %c0_i32, %c0_i32_0 : i32, i32, i32
  }
  func.func @transform_9(%arg0: i32) -> (i32, i32, i32) {
    %c0_i32 = arith.constant 0 : i32
    %c0_i32_0 = arith.constant 0 : i32
    %c0_i32_1 = arith.constant 0 : i32
    return %arg0, %c0_i32, %c0_i32_0 : i32, i32, i32
  }
}

module attributes {stable_mosaic.version = 11 : i64} {
  func.func @_bn_act_kernel(%arg0: i32, %arg1: memref<16x8x128xbf16, #tpu.memory_space<vmem>>, %arg2: memref<1x1x128xf32, #tpu.memory_space<vmem>>, %arg3: memref<1x1x128xf32, #tpu.memory_space<vmem>>, %arg4: memref<16x8x128xbf16, #tpu.memory_space<vmem>>) attributes {dimension_semantics = [#tpu.dimension_semantics<parallel>], iteration_bounds = array<i64: 1>, scalar_prefetch = 0 : i64, scratch_operands = 0 : i64, tpu.core_type = #tpu.core_type<tc>, window_params = [{transform_indices = @transform_0, window_bounds = array<i64: 16, 8, 128>}, {pipeline_mode = #tpu.pipeline_mode<synchronous>, transform_indices = @transform_1, window_bounds = array<i64: 1, 1, 128>}, {pipeline_mode = #tpu.pipeline_mode<synchronous>, transform_indices = @transform_2, window_bounds = array<i64: 1, 1, 128>}, {transform_indices = @transform_3, window_bounds = array<i64: 16, 8, 128>}]} {
    %c0 = arith.constant 0 : index
    %c0_0 = arith.constant 0 : index
    %c0_1 = arith.constant 0 : index
    %0 = vector.load %arg1[%c0, %c0_0, %c0_1] : memref<16x8x128xbf16, #tpu.memory_space<vmem>>, vector<16x8x128xbf16>
    %1 = arith.extf %0 : vector<16x8x128xbf16> to vector<16x8x128xf32>
    %c0_2 = arith.constant 0 : index
    %c0_3 = arith.constant 0 : index
    %c0_4 = arith.constant 0 : index
    %2 = vector.load %arg2[%c0_2, %c0_3, %c0_4] : memref<1x1x128xf32, #tpu.memory_space<vmem>>, vector<1x1x128xf32>
    %3 = vector.broadcast %2 : vector<1x1x128xf32> to vector<16x8x128xf32>
    %4 = arith.mulf %1, %3 : vector<16x8x128xf32>
    %c0_5 = arith.constant 0 : index
    %c0_6 = arith.constant 0 : index
    %c0_7 = arith.constant 0 : index
    %5 = vector.load %arg3[%c0_5, %c0_6, %c0_7] : memref<1x1x128xf32, #tpu.memory_space<vmem>>, vector<1x1x128xf32>
    %6 = vector.broadcast %5 : vector<1x1x128xf32> to vector<16x8x128xf32>
    %7 = arith.addf %4, %6 : vector<16x8x128xf32>
    %cst = arith.constant 0.000000e+00 : f32
    %8 = vector.broadcast %cst : f32 to vector<16x8x128xf32>
    %9 = arith.maximumf %7, %8 : vector<16x8x128xf32>
    %10 = arith.truncf %9 : vector<16x8x128xf32> to vector<16x8x128xbf16>
    %c0_8 = arith.constant 0 : index
    %c0_9 = arith.constant 0 : index
    %c0_10 = arith.constant 0 : index
    %11 = vector.load %arg4[%c0_8, %c0_9, %c0_10] : memref<16x8x128xbf16, #tpu.memory_space<vmem>>, vector<16x8x128xbf16>
    tpu.vector_store %arg4[%c0_8, %c0_9, %c0_10], %10 {strides = array<i32>} : memref<16x8x128xbf16, #tpu.memory_space<vmem>>, vector<16x8x128xbf16>,
    return
  }
  func.func @transform_0(%arg0: i32) -> (i32, i32, i32) {
    %c0_i32 = arith.constant 0 : i32
    %c0_i32_0 = arith.constant 0 : i32
    %c0_i32_1 = arith.constant 0 : i32
    return %arg0, %c0_i32, %c0_i32_0 : i32, i32, i32
  }
  func.func @transform_1(%arg0: i32) -> (i32, i32, i32) {
    %c0_i32 = arith.constant 0 : i32
    %c0_i32_0 = arith.constant 0 : i32
    %c0_i32_1 = arith.constant 0 : i32
    %c0_i32_2 = arith.constant 0 : i32
    return %c0_i32, %c0_i32_0, %c0_i32_1 : i32, i32, i32
  }
  func.func @transform_2(%arg0: i32) -> (i32, i32, i32) {
    %c0_i32 = arith.constant 0 : i32
    %c0_i32_0 = arith.constant 0 : i32
    %c0_i32_1 = arith.constant 0 : i32
    %c0_i32_2 = arith.constant 0 : i32
    return %c0_i32, %c0_i32_0, %c0_i32_1 : i32, i32, i32
  }
  func.func @transform_3(%arg0: i32) -> (i32, i32, i32) {
    %c0_i32 = arith.constant 0 : i32
    %c0_i32_0 = arith.constant 0 : i32
    %c0_i32_1 = arith.constant 0 : i32
    return %arg0, %c0_i32, %c0_i32_0 : i32, i32, i32
  }
}

module attributes {stable_mosaic.version = 11 : i64} {
  func.func @_conv3x3_s1_kernel(%arg0: i32, %arg1: memref<1x108x128xbf16, #tpu.memory_space<vmem>>, %arg2: memref<9x128x128xbf16, #tpu.memory_space<vmem>>, %arg3: memref<1x80x1xf32, #tpu.memory_space<vmem>>, %arg4: memref<1x80x128xbf16, #tpu.memory_space<vmem>>, %arg5: memref<1x1x128xf32, #tpu.memory_space<vmem>>, %arg6: memref<1x1x128xf32, #tpu.memory_space<vmem>>, %arg7: memref<108x128xf32, #tpu.memory_space<vmem>>, %arg8: memref<80x128xf32, #tpu.memory_space<vmem>>) attributes {dimension_semantics = [#tpu.dimension_semantics<parallel>], iteration_bounds = array<i64: 2>, scalar_prefetch = 0 : i64, scratch_operands = 2 : i64, tpu.core_type = #tpu.core_type<tc>, window_params = [{transform_indices = @transform_0, window_bounds = array<i64: 1, 108, 128>}, {pipeline_mode = #tpu.pipeline_mode<synchronous>, transform_indices = @transform_1, window_bounds = array<i64: 9, 128, 128>}, {pipeline_mode = #tpu.pipeline_mode<synchronous>, transform_indices = @transform_2, window_bounds = array<i64: 1, 80, 1>}, {transform_indices = @transform_3, window_bounds = array<i64: 1, 80, 128>}, {transform_indices = @transform_4, window_bounds = array<i64: 1, 1, 128>}, {transform_indices = @transform_5, window_bounds = array<i64: 1, 1, 128>}]} {
    %c0 = arith.constant 0 : index
    %c0_0 = arith.constant 0 : index
    %c0_1 = arith.constant 0 : index
    %0 = vector.load %arg1[%c0, %c0_0, %c0_1] : memref<1x108x128xbf16, #tpu.memory_space<vmem>>, vector<1x108x128xbf16>
    %1 = vector.shape_cast %0 : vector<1x108x128xbf16> to vector<108x128xbf16>
    %2 = arith.extf %1 : vector<108x128xbf16> to vector<108x128xf32>
    %c0_2 = arith.constant 0 : index
    %c0_3 = arith.constant 0 : index
    %3 = vector.load %arg7[%c0_2, %c0_3] : memref<108x128xf32, #tpu.memory_space<vmem>>, vector<108x128xf32>
    tpu.vector_store %arg7[%c0_2, %c0_3], %2 {strides = array<i32>} : memref<108x128xf32, #tpu.memory_space<vmem>>, vector<108x128xf32>,
    %c0_4 = arith.constant 0 : index
    %c0_5 = arith.constant 0 : index
    %4 = vector.load %arg7[%c0_4, %c0_5] : memref<108x128xf32, #tpu.memory_space<vmem>>, vector<80x128xf32>
    %5 = arith.truncf %4 : vector<80x128xf32> to vector<80x128xbf16>
    %c0_6 = arith.constant 0 : index
    %c0_7 = arith.constant 0 : index
    %c0_8 = arith.constant 0 : index
    %6 = vector.load %arg2[%c0_6, %c0_7, %c0_8] : memref<9x128x128xbf16, #tpu.memory_space<vmem>>, vector<1x128x128xbf16>
    %7 = vector.shape_cast %6 : vector<1x128x128xbf16> to vector<128x128xbf16>
    %cst = arith.constant dense<0.000000e+00> : vector<80x128xf32>
    %8 = tpu.matmul %5, %7, %cst {dimension_numbers = #tpu.dot_dimension_numbers<[1], [0], [0], [1], [0, 0, 1, 1], [], []>} : vector<80x128xbf16>, vector<128x128xbf16>, vector<80x128xf32> -> vector<80x128xf32>
    %c0_9 = arith.constant 0 : index
    %c0_10 = arith.constant 0 : index
    %9 = vector.load %arg8[%c0_9, %c0_10] : memref<80x128xf32, #tpu.memory_space<vmem>>, vector<80x128xf32>
    tpu.vector_store %arg8[%c0_9, %c0_10], %8 {strides = array<i32>} : memref<80x128xf32, #tpu.memory_space<vmem>>, vector<80x128xf32>,
    %c1 = arith.constant 1 : index
    %c0_11 = arith.constant 0 : index
    %10 = vector.load %arg7[%c1, %c0_11] : memref<108x128xf32, #tpu.memory_space<vmem>>, vector<80x128xf32>
    %11 = arith.truncf %10 : vector<80x128xf32> to vector<80x128xbf16>
    %c1_12 = arith.constant 1 : index
    %c0_13 = arith.constant 0 : index
    %c0_14 = arith.constant 0 : index
    %12 = vector.load %arg2[%c1_12, %c0_13, %c0_14] : memref<9x128x128xbf16, #tpu.memory_space<vmem>>, vector<1x128x128xbf16>
    %13 = vector.shape_cast %12 : vector<1x128x128xbf16> to vector<128x128xbf16>
    %cst_15 = arith.constant dense<0.000000e+00> : vector<80x128xf32>
    %14 = tpu.matmul %11, %13, %cst_15 {dimension_numbers = #tpu.dot_dimension_numbers<[1], [0], [0], [1], [0, 0, 1, 1], [], []>} : vector<80x128xbf16>, vector<128x128xbf16>, vector<80x128xf32> -> vector<80x128xf32>
    %c0_16 = arith.constant 0 : index
    %c0_17 = arith.constant 0 : index
    %15 = vector.load %arg8[%c0_16, %c0_17] : memref<80x128xf32, #tpu.memory_space<vmem>>, vector<80x128xf32>
    %16 = arith.addf %15, %14 : vector<80x128xf32>
    %c0_18 = arith.constant 0 : index
    %c0_19 = arith.constant 0 : index
    %17 = vector.load %arg8[%c0_18, %c0_19] : memref<80x128xf32, #tpu.memory_space<vmem>>, vector<80x128xf32>
    tpu.vector_store %arg8[%c0_18, %c0_19], %16 {strides = array<i32>} : memref<80x128xf32, #tpu.memory_space<vmem>>, vector<80x128xf32>,
    %c2 = arith.constant 2 : index
    %c0_20 = arith.constant 0 : index
    %18 = vector.load %arg7[%c2, %c0_20] : memref<108x128xf32, #tpu.memory_space<vmem>>, vector<80x128xf32>
    %19 = arith.truncf %18 : vector<80x128xf32> to vector<80x128xbf16>
    %c2_21 = arith.constant 2 : index
    %c0_22 = arith.constant 0 : index
    %c0_23 = arith.constant 0 : index
    %20 = vector.load %arg2[%c2_21, %c0_22, %c0_23] : memref<9x128x128xbf16, #tpu.memory_space<vmem>>, vector<1x128x128xbf16>
    %21 = vector.shape_cast %20 : vector<1x128x128xbf16> to vector<128x128xbf16>
    %cst_24 = arith.constant dense<0.000000e+00> : vector<80x128xf32>
    %22 = tpu.matmul %19, %21, %cst_24 {dimension_numbers = #tpu.dot_dimension_numbers<[1], [0], [0], [1], [0, 0, 1, 1], [], []>} : vector<80x128xbf16>, vector<128x128xbf16>, vector<80x128xf32> -> vector<80x128xf32>
    %c0_25 = arith.constant 0 : index
    %c0_26 = arith.constant 0 : index
    %23 = vector.load %arg8[%c0_25, %c0_26] : memref<80x128xf32, #tpu.memory_space<vmem>>, vector<80x128xf32>
    %24 = arith.addf %23, %22 : vector<80x128xf32>
    %c0_27 = arith.constant 0 : index
    %c0_28 = arith.constant 0 : index
    %25 = vector.load %arg8[%c0_27, %c0_28] : memref<80x128xf32, #tpu.memory_space<vmem>>, vector<80x128xf32>
    tpu.vector_store %arg8[%c0_27, %c0_28], %24 {strides = array<i32>} : memref<80x128xf32, #tpu.memory_space<vmem>>, vector<80x128xf32>,
    %c10 = arith.constant 10 : index
    %c0_29 = arith.constant 0 : index
    %26 = vector.load %arg7[%c10, %c0_29] : memref<108x128xf32, #tpu.memory_space<vmem>>, vector<80x128xf32>
    %27 = arith.truncf %26 : vector<80x128xf32> to vector<80x128xbf16>
    %c3 = arith.constant 3 : index
    %c0_30 = arith.constant 0 : index
    %c0_31 = arith.constant 0 : index
    %28 = vector.load %arg2[%c3, %c0_30, %c0_31] : memref<9x128x128xbf16, #tpu.memory_space<vmem>>, vector<1x128x128xbf16>
    %29 = vector.shape_cast %28 : vector<1x128x128xbf16> to vector<128x128xbf16>
    %cst_32 = arith.constant dense<0.000000e+00> : vector<80x128xf32>
    %30 = tpu.matmul %27, %29, %cst_32 {dimension_numbers = #tpu.dot_dimension_numbers<[1], [0], [0], [1], [0, 0, 1, 1], [], []>} : vector<80x128xbf16>, vector<128x128xbf16>, vector<80x128xf32> -> vector<80x128xf32>
    %c0_33 = arith.constant 0 : index
    %c0_34 = arith.constant 0 : index
    %31 = vector.load %arg8[%c0_33, %c0_34] : memref<80x128xf32, #tpu.memory_space<vmem>>, vector<80x128xf32>
    %32 = arith.addf %31, %30 : vector<80x128xf32>
    %c0_35 = arith.constant 0 : index
    %c0_36 = arith.constant 0 : index
    %33 = vector.load %arg8[%c0_35, %c0_36] : memref<80x128xf32, #tpu.memory_space<vmem>>, vector<80x128xf32>
    tpu.vector_store %arg8[%c0_35, %c0_36], %32 {strides = array<i32>} : memref<80x128xf32, #tpu.memory_space<vmem>>, vector<80x128xf32>,
    %c11 = arith.constant 11 : index
    %c0_37 = arith.constant 0 : index
    %34 = vector.load %arg7[%c11, %c0_37] : memref<108x128xf32, #tpu.memory_space<vmem>>, vector<80x128xf32>
    %35 = arith.truncf %34 : vector<80x128xf32> to vector<80x128xbf16>
    %c4 = arith.constant 4 : index
    %c0_38 = arith.constant 0 : index
    %c0_39 = arith.constant 0 : index
    %36 = vector.load %arg2[%c4, %c0_38, %c0_39] : memref<9x128x128xbf16, #tpu.memory_space<vmem>>, vector<1x128x128xbf16>
    %37 = vector.shape_cast %36 : vector<1x128x128xbf16> to vector<128x128xbf16>
    %cst_40 = arith.constant dense<0.000000e+00> : vector<80x128xf32>
    %38 = tpu.matmul %35, %37, %cst_40 {dimension_numbers = #tpu.dot_dimension_numbers<[1], [0], [0], [1], [0, 0, 1, 1], [], []>} : vector<80x128xbf16>, vector<128x128xbf16>, vector<80x128xf32> -> vector<80x128xf32>
    %c0_41 = arith.constant 0 : index
    %c0_42 = arith.constant 0 : index
    %39 = vector.load %arg8[%c0_41, %c0_42] : memref<80x128xf32, #tpu.memory_space<vmem>>, vector<80x128xf32>
    %40 = arith.addf %39, %38 : vector<80x128xf32>
    %c0_43 = arith.constant 0 : index
    %c0_44 = arith.constant 0 : index
    %41 = vector.load %arg8[%c0_43, %c0_44] : memref<80x128xf32, #tpu.memory_space<vmem>>, vector<80x128xf32>
    tpu.vector_store %arg8[%c0_43, %c0_44], %40 {strides = array<i32>} : memref<80x128xf32, #tpu.memory_space<vmem>>, vector<80x128xf32>,
    %c12 = arith.constant 12 : index
    %c0_45 = arith.constant 0 : index
    %42 = vector.load %arg7[%c12, %c0_45] : memref<108x128xf32, #tpu.memory_space<vmem>>, vector<80x128xf32>
    %43 = arith.truncf %42 : vector<80x128xf32> to vector<80x128xbf16>
    %c5 = arith.constant 5 : index
    %c0_46 = arith.constant 0 : index
    %c0_47 = arith.constant 0 : index
    %44 = vector.load %arg2[%c5, %c0_46, %c0_47] : memref<9x128x128xbf16, #tpu.memory_space<vmem>>, vector<1x128x128xbf16>
    %45 = vector.shape_cast %44 : vector<1x128x128xbf16> to vector<128x128xbf16>
    %cst_48 = arith.constant dense<0.000000e+00> : vector<80x128xf32>
    %46 = tpu.matmul %43, %45, %cst_48 {dimension_numbers = #tpu.dot_dimension_numbers<[1], [0], [0], [1], [0, 0, 1, 1], [], []>} : vector<80x128xbf16>, vector<128x128xbf16>, vector<80x128xf32> -> vector<80x128xf32>
    %c0_49 = arith.constant 0 : index
    %c0_50 = arith.constant 0 : index
    %47 = vector.load %arg8[%c0_49, %c0_50] : memref<80x128xf32, #tpu.memory_space<vmem>>, vector<80x128xf32>
    %48 = arith.addf %47, %46 : vector<80x128xf32>
    %c0_51 = arith.constant 0 : index
    %c0_52 = arith.constant 0 : index
    %49 = vector.load %arg8[%c0_51, %c0_52] : memref<80x128xf32, #tpu.memory_space<vmem>>, vector<80x128xf32>
    tpu.vector_store %arg8[%c0_51, %c0_52], %48 {strides = array<i32>} : memref<80x128xf32, #tpu.memory_space<vmem>>, vector<80x128xf32>,
    %c20 = arith.constant 20 : index
    %c0_53 = arith.constant 0 : index
    %50 = vector.load %arg7[%c20, %c0_53] : memref<108x128xf32, #tpu.memory_space<vmem>>, vector<80x128xf32>
    %51 = arith.truncf %50 : vector<80x128xf32> to vector<80x128xbf16>
    %c6 = arith.constant 6 : index
    %c0_54 = arith.constant 0 : index
    %c0_55 = arith.constant 0 : index
    %52 = vector.load %arg2[%c6, %c0_54, %c0_55] : memref<9x128x128xbf16, #tpu.memory_space<vmem>>, vector<1x128x128xbf16>
    %53 = vector.shape_cast %52 : vector<1x128x128xbf16> to vector<128x128xbf16>
    %cst_56 = arith.constant dense<0.000000e+00> : vector<80x128xf32>
    %54 = tpu.matmul %51, %53, %cst_56 {dimension_numbers = #tpu.dot_dimension_numbers<[1], [0], [0], [1], [0, 0, 1, 1], [], []>} : vector<80x128xbf16>, vector<128x128xbf16>, vector<80x128xf32> -> vector<80x128xf32>
    %c0_57 = arith.constant 0 : index
    %c0_58 = arith.constant 0 : index
    %55 = vector.load %arg8[%c0_57, %c0_58] : memref<80x128xf32, #tpu.memory_space<vmem>>, vector<80x128xf32>
    %56 = arith.addf %55, %54 : vector<80x128xf32>
    %c0_59 = arith.constant 0 : index
    %c0_60 = arith.constant 0 : index
    %57 = vector.load %arg8[%c0_59, %c0_60] : memref<80x128xf32, #tpu.memory_space<vmem>>, vector<80x128xf32>
    tpu.vector_store %arg8[%c0_59, %c0_60], %56 {strides = array<i32>} : memref<80x128xf32, #tpu.memory_space<vmem>>, vector<80x128xf32>,
    %c21 = arith.constant 21 : index
    %c0_61 = arith.constant 0 : index
    %58 = vector.load %arg7[%c21, %c0_61] : memref<108x128xf32, #tpu.memory_space<vmem>>, vector<80x128xf32>
    %59 = arith.truncf %58 : vector<80x128xf32> to vector<80x128xbf16>
    %c7 = arith.constant 7 : index
    %c0_62 = arith.constant 0 : index
    %c0_63 = arith.constant 0 : index
    %60 = vector.load %arg2[%c7, %c0_62, %c0_63] : memref<9x128x128xbf16, #tpu.memory_space<vmem>>, vector<1x128x128xbf16>
    %61 = vector.shape_cast %60 : vector<1x128x128xbf16> to vector<128x128xbf16>
    %cst_64 = arith.constant dense<0.000000e+00> : vector<80x128xf32>
    %62 = tpu.matmul %59, %61, %cst_64 {dimension_numbers = #tpu.dot_dimension_numbers<[1], [0], [0], [1], [0, 0, 1, 1], [], []>} : vector<80x128xbf16>, vector<128x128xbf16>, vector<80x128xf32> -> vector<80x128xf32>
    %c0_65 = arith.constant 0 : index
    %c0_66 = arith.constant 0 : index
    %63 = vector.load %arg8[%c0_65, %c0_66] : memref<80x128xf32, #tpu.memory_space<vmem>>, vector<80x128xf32>
    %64 = arith.addf %63, %62 : vector<80x128xf32>
    %c0_67 = arith.constant 0 : index
    %c0_68 = arith.constant 0 : index
    %65 = vector.load %arg8[%c0_67, %c0_68] : memref<80x128xf32, #tpu.memory_space<vmem>>, vector<80x128xf32>
    tpu.vector_store %arg8[%c0_67, %c0_68], %64 {strides = array<i32>} : memref<80x128xf32, #tpu.memory_space<vmem>>, vector<80x128xf32>,
    %c22 = arith.constant 22 : index
    %c0_69 = arith.constant 0 : index
    %66 = vector.load %arg7[%c22, %c0_69] : memref<108x128xf32, #tpu.memory_space<vmem>>, vector<80x128xf32>
    %67 = arith.truncf %66 : vector<80x128xf32> to vector<80x128xbf16>
    %c8 = arith.constant 8 : index
    %c0_70 = arith.constant 0 : index
    %c0_71 = arith.constant 0 : index
    %68 = vector.load %arg2[%c8, %c0_70, %c0_71] : memref<9x128x128xbf16, #tpu.memory_space<vmem>>, vector<1x128x128xbf16>
    %69 = vector.shape_cast %68 : vector<1x128x128xbf16> to vector<128x128xbf16>
    %cst_72 = arith.constant dense<0.000000e+00> : vector<80x128xf32>
    %70 = tpu.matmul %67, %69, %cst_72 {dimension_numbers = #tpu.dot_dimension_numbers<[1], [0], [0], [1], [0, 0, 1, 1], [], []>} : vector<80x128xbf16>, vector<128x128xbf16>, vector<80x128xf32> -> vector<80x128xf32>
    %c0_73 = arith.constant 0 : index
    %c0_74 = arith.constant 0 : index
    %71 = vector.load %arg8[%c0_73, %c0_74] : memref<80x128xf32, #tpu.memory_space<vmem>>, vector<80x128xf32>
    %72 = arith.addf %71, %70 : vector<80x128xf32>
    %c0_75 = arith.constant 0 : index
    %c0_76 = arith.constant 0 : index
    %73 = vector.load %arg8[%c0_75, %c0_76] : memref<80x128xf32, #tpu.memory_space<vmem>>, vector<80x128xf32>
    tpu.vector_store %arg8[%c0_75, %c0_76], %72 {strides = array<i32>} : memref<80x128xf32, #tpu.memory_space<vmem>>, vector<80x128xf32>,
    %c0_77 = arith.constant 0 : index
    %c0_78 = arith.constant 0 : index
    %74 = vector.load %arg8[%c0_77, %c0_78] : memref<80x128xf32, #tpu.memory_space<vmem>>, vector<80x128xf32>
    %75 = arith.truncf %74 : vector<80x128xf32> to vector<80x128xbf16>
    %c0_79 = arith.constant 0 : index
    %c0_80 = arith.constant 0 : index
    %c0_81 = arith.constant 0 : index
    %76 = vector.load %arg4[%c0_79, %c0_80, %c0_81] : memref<1x80x128xbf16, #tpu.memory_space<vmem>>, vector<1x80x128xbf16>
    %77 = vector.shape_cast %76 : vector<1x80x128xbf16> to vector<80x128xbf16>
    %78 = vector.shape_cast %75 : vector<80x128xbf16> to vector<1x80x128xbf16>
    tpu.vector_store %arg4[%c0_79, %c0_80, %c0_81], %78 {strides = array<i32>} : memref<1x80x128xbf16, #tpu.memory_space<vmem>>, vector<1x80x128xbf16>,
    %c0_82 = arith.constant 0 : index
    %c0_83 = arith.constant 0 : index
    %c0_84 = arith.constant 0 : index
    %79 = vector.load %arg3[%c0_82, %c0_83, %c0_84] : memref<1x80x1xf32, #tpu.memory_space<vmem>>, vector<1x80x1xf32>
    %80 = vector.shape_cast %79 : vector<1x80x1xf32> to vector<80x1xf32>
    %81 = vector.broadcast %80 : vector<80x1xf32> to vector<80x128xf32>
    %82 = arith.mulf %74, %81 : vector<80x128xf32>
    %cst_85 = arith.constant dense<0.000000e+00> : vector<128xf32>
    %83 = vector.multi_reduction <add>, %82, %cst_85 [0] : vector<80x128xf32> to vector<128xf32>
    %84 = vector.shape_cast %83 : vector<128xf32> to vector<1x128xf32>
    %c0_86 = arith.constant 0 : index
    %c0_87 = arith.constant 0 : index
    %c0_88 = arith.constant 0 : index
    %85 = vector.load %arg5[%c0_86, %c0_87, %c0_88] : memref<1x1x128xf32, #tpu.memory_space<vmem>>, vector<1x1x128xf32>
    %86 = vector.shape_cast %85 : vector<1x1x128xf32> to vector<1x128xf32>
    %87 = vector.shape_cast %84 : vector<1x128xf32> to vector<1x1x128xf32>
    tpu.vector_store %arg5[%c0_86, %c0_87, %c0_88], %87 {strides = array<i32>} : memref<1x1x128xf32, #tpu.memory_space<vmem>>, vector<1x1x128xf32>,
    %88 = arith.mulf %74, %74 : vector<80x128xf32>
    %89 = vector.broadcast %80 : vector<80x1xf32> to vector<80x128xf32>
    %90 = arith.mulf %88, %89 : vector<80x128xf32>
    %cst_89 = arith.constant dense<0.000000e+00> : vector<128xf32>
    %91 = vector.multi_reduction <add>, %90, %cst_89 [0] : vector<80x128xf32> to vector<128xf32>
    %92 = vector.shape_cast %91 : vector<128xf32> to vector<1x128xf32>
    %c0_90 = arith.constant 0 : index
    %c0_91 = arith.constant 0 : index
    %c0_92 = arith.constant 0 : index
    %93 = vector.load %arg6[%c0_90, %c0_91, %c0_92] : memref<1x1x128xf32, #tpu.memory_space<vmem>>, vector<1x1x128xf32>
    %94 = vector.shape_cast %93 : vector<1x1x128xf32> to vector<1x128xf32>
    %95 = vector.shape_cast %92 : vector<1x128xf32> to vector<1x1x128xf32>
    tpu.vector_store %arg6[%c0_90, %c0_91, %c0_92], %95 {strides = array<i32>} : memref<1x1x128xf32, #tpu.memory_space<vmem>>, vector<1x1x128xf32>,
    return
  }
  func.func @transform_0(%arg0: i32) -> (i32, i32, i32) {
    %c0_i32 = arith.constant 0 : i32
    %c0_i32_0 = arith.constant 0 : i32
    %c0_i32_1 = arith.constant 0 : i32
    return %arg0, %c0_i32, %c0_i32_0 : i32, i32, i32
  }
  func.func @transform_1(%arg0: i32) -> (i32, i32, i32) {
    %c0_i32 = arith.constant 0 : i32
    %c0_i32_0 = arith.constant 0 : i32
    %c0_i32_1 = arith.constant 0 : i32
    %c0_i32_2 = arith.constant 0 : i32
    return %c0_i32, %c0_i32_0, %c0_i32_1 : i32, i32, i32
  }
  func.func @transform_2(%arg0: i32) -> (i32, i32, i32) {
    %c0_i32 = arith.constant 0 : i32
    %c0_i32_0 = arith.constant 0 : i32
    %c0_i32_1 = arith.constant 0 : i32
    %c0_i32_2 = arith.constant 0 : i32
    return %c0_i32, %c0_i32_0, %c0_i32_1 : i32, i32, i32
  }
  func.func @transform_3(%arg0: i32) -> (i32, i32, i32) {
    %c0_i32 = arith.constant 0 : i32
    %c0_i32_0 = arith.constant 0 : i32
    %c0_i32_1 = arith.constant 0 : i32
    return %arg0, %c0_i32, %c0_i32_0 : i32, i32, i32
  }
  func.func @transform_4(%arg0: i32) -> (i32, i32, i32) {
    %c0_i32 = arith.constant 0 : i32
    %c0_i32_0 = arith.constant 0 : i32
    %c0_i32_1 = arith.constant 0 : i32
    return %arg0, %c0_i32, %c0_i32_0 : i32, i32, i32
  }
  func.func @transform_5(%arg0: i32) -> (i32, i32, i32) {
    %c0_i32 = arith.constant 0 : i32
    %c0_i32_0 = arith.constant 0 : i32
    %c0_i32_1 = arith.constant 0 : i32
    return %arg0, %c0_i32, %c0_i32_0 : i32, i32, i32
  }
}

module attributes {stable_mosaic.version = 11 : i64} {
  func.func @_bn_add_bn_act_kernel(%arg0: i32, %arg1: memref<16x10x128xbf16, #tpu.memory_space<vmem>>, %arg2: memref<1x1x128xf32, #tpu.memory_space<vmem>>, %arg3: memref<1x1x128xf32, #tpu.memory_space<vmem>>, %arg4: memref<16x8x128xbf16, #tpu.memory_space<vmem>>, %arg5: memref<1x1x128xf32, #tpu.memory_space<vmem>>, %arg6: memref<1x1x128xf32, #tpu.memory_space<vmem>>, %arg7: memref<16x8x128xf32, #tpu.memory_space<vmem>>) attributes {dimension_semantics = [#tpu.dimension_semantics<parallel>], iteration_bounds = array<i64: 1>, scalar_prefetch = 0 : i64, scratch_operands = 0 : i64, tpu.core_type = #tpu.core_type<tc>, window_params = [{transform_indices = @transform_0, window_bounds = array<i64: 16, 10, 128>}, {pipeline_mode = #tpu.pipeline_mode<synchronous>, transform_indices = @transform_1, window_bounds = array<i64: 1, 1, 128>}, {pipeline_mode = #tpu.pipeline_mode<synchronous>, transform_indices = @transform_2, window_bounds = array<i64: 1, 1, 128>}, {transform_indices = @transform_3, window_bounds = array<i64: 16, 8, 128>}, {pipeline_mode = #tpu.pipeline_mode<synchronous>, transform_indices = @transform_4, window_bounds = array<i64: 1, 1, 128>}, {pipeline_mode = #tpu.pipeline_mode<synchronous>, transform_indices = @transform_5, window_bounds = array<i64: 1, 1, 128>}, {transform_indices = @transform_6, window_bounds = array<i64: 16, 8, 128>}]} {
    %c0 = arith.constant 0 : index
    %c0_0 = arith.constant 0 : index
    %c0_1 = arith.constant 0 : index
    %0 = vector.load %arg1[%c0, %c0_0, %c0_1] : memref<16x10x128xbf16, #tpu.memory_space<vmem>>, vector<16x8x128xbf16>
    %1 = arith.extf %0 : vector<16x8x128xbf16> to vector<16x8x128xf32>
    %c0_2 = arith.constant 0 : index
    %c0_3 = arith.constant 0 : index
    %c0_4 = arith.constant 0 : index
    %2 = vector.load %arg2[%c0_2, %c0_3, %c0_4] : memref<1x1x128xf32, #tpu.memory_space<vmem>>, vector<1x1x128xf32>
    %3 = vector.broadcast %2 : vector<1x1x128xf32> to vector<16x8x128xf32>
    %4 = arith.mulf %1, %3 : vector<16x8x128xf32>
    %c0_5 = arith.constant 0 : index
    %c0_6 = arith.constant 0 : index
    %c0_7 = arith.constant 0 : index
    %5 = vector.load %arg3[%c0_5, %c0_6, %c0_7] : memref<1x1x128xf32, #tpu.memory_space<vmem>>, vector<1x1x128xf32>
    %6 = vector.broadcast %5 : vector<1x1x128xf32> to vector<16x8x128xf32>
    %7 = arith.addf %4, %6 : vector<16x8x128xf32>
    %c0_8 = arith.constant 0 : index
    %c0_9 = arith.constant 0 : index
    %c0_10 = arith.constant 0 : index
    %8 = vector.load %arg4[%c0_8, %c0_9, %c0_10] : memref<16x8x128xbf16, #tpu.memory_space<vmem>>, vector<16x8x128xbf16>
    %9 = arith.extf %8 : vector<16x8x128xbf16> to vector<16x8x128xf32>
    %c0_11 = arith.constant 0 : index
    %c0_12 = arith.constant 0 : index
    %c0_13 = arith.constant 0 : index
    %10 = vector.load %arg5[%c0_11, %c0_12, %c0_13] : memref<1x1x128xf32, #tpu.memory_space<vmem>>, vector<1x1x128xf32>
    %11 = vector.broadcast %10 : vector<1x1x128xf32> to vector<16x8x128xf32>
    %12 = arith.mulf %9, %11 : vector<16x8x128xf32>
    %13 = arith.addf %7, %12 : vector<16x8x128xf32>
    %c0_14 = arith.constant 0 : index
    %c0_15 = arith.constant 0 : index
    %c0_16 = arith.constant 0 : index
    %14 = vector.load %arg6[%c0_14, %c0_15, %c0_16] : memref<1x1x128xf32, #tpu.memory_space<vmem>>, vector<1x1x128xf32>
    %15 = vector.broadcast %14 : vector<1x1x128xf32> to vector<16x8x128xf32>
    %16 = arith.addf %13, %15 : vector<16x8x128xf32>
    %cst = arith.constant 0.000000e+00 : f32
    %17 = vector.broadcast %cst : f32 to vector<16x8x128xf32>
    %18 = arith.maximumf %16, %17 : vector<16x8x128xf32>
    %c0_17 = arith.constant 0 : index
    %c0_18 = arith.constant 0 : index
    %c0_19 = arith.constant 0 : index
    %19 = vector.load %arg7[%c0_17, %c0_18, %c0_19] : memref<16x8x128xf32, #tpu.memory_space<vmem>>, vector<16x8x128xf32>
    tpu.vector_store %arg7[%c0_17, %c0_18, %c0_19], %18 {strides = array<i32>} : memref<16x8x128xf32, #tpu.memory_space<vmem>>, vector<16x8x128xf32>,
    return
  }
  func.func @transform_0(%arg0: i32) -> (i32, i32, i32) {
    %c0_i32 = arith.constant 0 : i32
    %c0_i32_0 = arith.constant 0 : i32
    %c0_i32_1 = arith.constant 0 : i32
    return %arg0, %c0_i32, %c0_i32_0 : i32, i32, i32
  }
  func.func @transform_1(%arg0: i32) -> (i32, i32, i32) {
    %c0_i32 = arith.constant 0 : i32
    %c0_i32_0 = arith.constant 0 : i32
    %c0_i32_1 = arith.constant 0 : i32
    %c0_i32_2 = arith.constant 0 : i32
    return %c0_i32, %c0_i32_0, %c0_i32_1 : i32, i32, i32
  }
  func.func @transform_2(%arg0: i32) -> (i32, i32, i32) {
    %c0_i32 = arith.constant 0 : i32
    %c0_i32_0 = arith.constant 0 : i32
    %c0_i32_1 = arith.constant 0 : i32
    %c0_i32_2 = arith.constant 0 : i32
    return %c0_i32, %c0_i32_0, %c0_i32_1 : i32, i32, i32
  }
  func.func @transform_3(%arg0: i32) -> (i32, i32, i32) {
    %c0_i32 = arith.constant 0 : i32
    %c0_i32_0 = arith.constant 0 : i32
    %c0_i32_1 = arith.constant 0 : i32
    return %arg0, %c0_i32, %c0_i32_0 : i32, i32, i32
  }
  func.func @transform_4(%arg0: i32) -> (i32, i32, i32) {
    %c0_i32 = arith.constant 0 : i32
    %c0_i32_0 = arith.constant 0 : i32
    %c0_i32_1 = arith.constant 0 : i32
    %c0_i32_2 = arith.constant 0 : i32
    return %c0_i32, %c0_i32_0, %c0_i32_1 : i32, i32, i32
  }
  func.func @transform_5(%arg0: i32) -> (i32, i32, i32) {
    %c0_i32 = arith.constant 0 : i32
    %c0_i32_0 = arith.constant 0 : i32
    %c0_i32_1 = arith.constant 0 : i32
    %c0_i32_2 = arith.constant 0 : i32
    return %c0_i32, %c0_i32_0, %c0_i32_1 : i32, i32, i32
  }
  func.func @transform_6(%arg0: i32) -> (i32, i32, i32) {
    %c0_i32 = arith.constant 0 : i32
    %c0_i32_0 = arith.constant 0 : i32
    %c0_i32_1 = arith.constant 0 : i32
    return %arg0, %c0_i32, %c0_i32_0 : i32, i32, i32
  }
}

</mosaic_0001>

<bundles_post_ra>
// kernel: basic_block_forward.5
= control target key start
LH: loop header
LB: loop body
LE: loop exit
PB: predicated region body
PF: predicated region fallthrough
CT: control target
= control target key end

     0   :  { %s342_s0 = inlined_call_operand.vmem [shape: bf16[16,8,128], index: 0, kind: input, shape index: {}]   ;;  %s343_s1 = inlined_call_operand.vmem [shape: f32[1,1,128], index: 1, kind: input, shape index: {}]   ;;  %s344_s2 = inlined_call_operand.vmem [shape: f32[1,1,128], index: 2, kind: input, shape index: {}]   ;;  %s345_s3 = inlined_call_operand.vmem [shape: bf16[16,8,128], index: 3, kind: output, shape index: {}]  }
   0x1   :  { %v147_v0 = vld [vmem:[%s342_s0] sm:$0xff]   ;;  %v218_v4 = vld [vmem:[%s342_s0 + $0x8] sm:$0xff]   ;;  %v219_v5 = vld [vmem:[%s342_s0 + $0x10] sm:$0xff]  }
   0x2   :  { %v258_v1 = vld [vmem:[%s343_s1] ss:$0 sm:$0xff]  ;;  %v148_v2 = vunpack.c.l.bf16 %v147_v0  ;;  %v149_v3 = vunpack.c.h.bf16 %v147_v0  ;;  %v220_v6 = vld [vmem:[%s342_s0 + $0x18] sm:$0xff]   ;;  %v152_v8 = vunpack.c.l.bf16 %v218_v4  ;;  %v153_v9 = vunpack.c.h.bf16 %v218_v4  ;;  %v222_v33 = vld [vmem:[%s342_s0 + $0x28] sm:$0xff]  }
   0x3   :  { %v272_v7 = vld [vmem:[%s344_s2] ss:$0 sm:$0xff]  ;;  %v156_v10 = vunpack.c.l.bf16 %v219_v5  ;;  %v157_v11 = vunpack.c.h.bf16 %v219_v5  ;;  %v160_v14 = vunpack.c.l.bf16 %v220_v6  ;;  %v161_v15 = vunpack.c.h.bf16 %v220_v6  ;;  %v223_v38 = vld [vmem:[%s342_s0 + $0x30] sm:$0xff]   ;;  %v224_v43 = vld [vmem:[%s342_s0 + $0x38] sm:$0xff]  }
   0x4   :  { %v53_v12 = vmul.f32 %v148_v2, %v258_v1  ;;  %v54_v13 = vmul.f32 %v149_v3, %v258_v1  ;;  %v55_v16 = vmul.f32 %v152_v8, %v258_v1  ;;  %v56_v17 = vmul.f32 %v153_v9, %v258_v1  ;;  %v221_v28 = vld [vmem:[%s342_s0 + $0x20] sm:$0xff]  }
   0x5   :  { %v57_v18 = vmul.f32 %v156_v10, %v258_v1  ;;  %v58_v19 = vmul.f32 %v157_v11, %v258_v1  ;;  %v59_v22 = vmul.f32 %v160_v14, %v258_v1  ;;  %v60_v23 = vmul.f32 %v161_v15, %v258_v1 }
   0x6   :  { %v76_v20 = vadd.f32 %v272_v7, %v53_v12  ;;  %v77_v21 = vadd.f32 %v272_v7, %v54_v13  ;;  %v78_v24 = vadd.f32 %v272_v7, %v55_v16  ;;  %v79_v25 = vadd.f32 %v272_v7, %v56_v17 }
   0x7   :  { %v80_v26 = vadd.f32 %v272_v7, %v57_v18  ;;  %v81_v27 = vadd.f32 %v272_v7, %v58_v19  ;;  %v82_v31 = vadd.f32 %v272_v7, %v59_v22  ;;  %v83_v32 = vadd.f32 %v272_v7, %v60_v23 }
   0x8   :  { %v92_v29 = vmax.f32 %v76_v20, 0.0  ;;  %v93_v30 = vmax.f32 %v77_v21, 0.0  ;;  %v94_v34 = vmax.f32 %v78_v24, 0.0  ;;  %v95_v35 = vmax.f32 %v79_v25, 0.0 }
   0x9   :  { %v96_v36 = vmax.f32 %v80_v26, 0.0  ;;  %v97_v37 = vmax.f32 %v81_v27, 0.0  ;;  %v98_v40 = vmax.f32 %v82_v31, 0.0  ;;  %v99_v41 = vmax.f32 %v83_v32, 0.0 }
   0xa   :  { %v181_v39 = vpack.c.bf16 %v93_v30, %v92_v29  ;;  %v164_v42 = vunpack.c.l.bf16 %v221_v28  ;;  %v186_v44 = vpack.c.bf16 %v95_v35, %v94_v34  ;;  %v165_v46 = vunpack.c.h.bf16 %v221_v28 }
   0xb   :  { %v191_v45 = vpack.c.bf16 %v97_v37, %v96_v36  ;;  %v168_v47 = vunpack.c.l.bf16 %v222_v33  ;;  %v196_v48 = vpack.c.bf16 %v99_v41, %v98_v40  ;;  %v169_v50 = vunpack.c.h.bf16 %v222_v33 }
   0xc   :  { %182 = vst [vmem:[%s345_s3] sm:$0xff] %v181_v39   ;;  %v61_v49 = vmul.f32 %v164_v42, %v258_v1  ;;  %v172_v51 = vunpack.c.l.bf16 %v223_v38  ;;  %225 = vst [vmem:[%s345_s3 + $0x8] sm:$0xff] %v186_v44   ;;  %v62_v52 = vmul.f32 %v165_v46, %v258_v1  ;;  %v173_v54 = vunpack.c.h.bf16 %v223_v38 }
   0xd   :  { %226 = vst [vmem:[%s345_s3 + $0x10] sm:$0xff] %v191_v45   ;;  %v63_v53 = vmul.f32 %v168_v47, %v258_v1  ;;  %v176_v55 = vunpack.c.l.bf16 %v224_v43  ;;  %227 = vst [vmem:[%s345_s3 + $0x18] sm:$0xff] %v196_v48   ;;  %v64_v57 = vmul.f32 %v169_v50, %v258_v1  ;;  %v177_v59 = vunpack.c.h.bf16 %v224_v43 }
   0xe   :  { %v84_v56 = vadd.f32 %v272_v7, %v61_v49  ;;  %v65_v58 = vmul.f32 %v172_v51, %v258_v1  ;;  %v85_v60 = vadd.f32 %v272_v7, %v62_v52  ;;  %v66_v62 = vmul.f32 %v173_v54, %v258_v1 }
   0xf   :  { %v86_v61 = vadd.f32 %v272_v7, %v63_v53  ;;  %v67_v63 = vmul.f32 %v176_v55, %v258_v1  ;;  %v87_v2 = vadd.f32 %v272_v7, %v64_v57  ;;  %v68_v4 = vmul.f32 %v177_v59, %v258_v1 }
  0x10   :  { %v100_v0 = vmax.f32 %v84_v56, 0.0  ;;  %v88_v3 = vadd.f32 %v272_v7, %v65_v58  ;;  %v101_v5 = vmax.f32 %v85_v60, 0.0  ;;  %v89_v8 = vadd.f32 %v272_v7, %v66_v62 }
  0x11   :  { %v102_v6 = vmax.f32 %v86_v61, 0.0  ;;  %v90_v9 = vadd.f32 %v272_v7, %v67_v63  ;;  %v103_v10 = vmax.f32 %v87_v2, 0.0  ;;  %v91_v12 = vadd.f32 %v272_v7, %v68_v4 }
  0x12   :  { %v104_v11 = vmax.f32 %v88_v3, 0.0  ;;  %v201_v13 = vpack.c.bf16 %v101_v5, %v100_v0  ;;  %v105_v14 = vmax.f32 %v89_v8, 0.0 }
  0x13   :  { %v106_v15 = vmax.f32 %v90_v9, 0.0  ;;  %v206_v16 = vpack.c.bf16 %v103_v10, %v102_v6  ;;  %v107_v17 = vmax.f32 %v91_v12, 0.0 }
  0x14   :  { %228 = vst [vmem:[%s345_s3 + $0x20] sm:$0xff] %v201_v13   ;;  %v211_v1 = vpack.c.bf16 %v105_v14, %v104_v11 }
  0x15   :  { %229 = vst [vmem:[%s345_s3 + $0x28] sm:$0xff] %v206_v16   ;;  %v216_v18 = vpack.c.bf16 %v107_v17, %v106_v15 }
  0x16   :  { %230 = vst [vmem:[%s345_s3 + $0x30] sm:$0xff] %v211_v1  }
  0x17   :  { %231 = vst [vmem:[%s345_s3 + $0x38] sm:$0xff] %v216_v18  }

// kernel: basic_block_forward.4
= control target key start
LH: loop header
LB: loop body
LE: loop exit
PB: predicated region body
PF: predicated region fallthrough
CT: control target
= control target key end

     0   :  { %vm125_vm0 = vcmask 1041408   ;;  %vm423_vm1 = vcmask 31744   ;;  %vm100_vm2 = vcmask 293888   ;;  %s1176_s3 = inlined_call_operand.vmem [shape: bf16[4,128], index: 3, kind: input, shape index: {}]   ;;  %s1177_s1 = inlined_call_operand.vmem [shape: bf16[36,128], index: 1, kind: input, shape index: {}]   ;;  %s1178_s2 = inlined_call_operand.vmem [shape: bf16[128,4], index: 2, kind: input, shape index: {}]   ;;  %s1179_s0 = inlined_call_operand.vmem [shape: bf16[128,36], index: 0, kind: input, shape index: {}]   ;;  %s1180_s7 = inlined_call_operand.vmem [shape: bf16[128,128], index: 7, kind: output, shape index: {3}]   ;;  %s1181_s4 = inlined_call_operand.vmem [shape: bf16[128,128], index: 4, kind: output, shape index: {0}]   ;;  %s1182_s8 = inlined_call_operand.vmem [shape: f32[1,1,128], index: 8, kind: output, shape index: {4}]   ;;  %s1183_s9 = inlined_call_operand.vmem [shape: f32[1,1,128], index: 9, kind: output, shape index: {5}]   ;;  %s1184_s5 = inlined_call_operand.vmem [shape: f32[1,1,128], index: 5, kind: output, shape index: {1}]   ;;  %s1185_s6 = inlined_call_operand.vmem [shape: f32[1,1,128], index: 6, kind: output, shape index: {2}]  }
   0x1   :  { %v382_v0 = vld [vmem:[%s1176_s3] sm:$0x3]  ;;  %v969_v4 = vld [vmem:[%s1178_s2 + $0x8] sm:$0xff]   ;;  %v971_v6 = vld [vmem:[%s1177_s1 + $0x10] ss:$0 sps:$4 sm:$0x33]  }
   0x2   :  { %966 = vmatprep.subr.msk.bf16.mxu1 %vm125_vm0, %v382_v0  ;;  %v449_v1 = vsel %vm125_vm0, %v382_v0, 0  ;;  %v967_v2 = vld [vmem:[%s1177_s1] sm:$0xff]   ;;  %v970_v5 = vld [vmem:[%s1177_s1 + $0x8] sm:$0xff]   ;;  %v972_v7 = vld [vmem:[%s1178_s2 + $0x10] sm:$0xff]   ;;  %v127_v9 = vsel %vm125_vm0, %v971_v6, 0 }
   0x3   :  { %948 = vmatpush3.bf16.msra.mxu1 %v449_v1  ;;  %v968_v3 = vld [vmem:[%s1178_s2] sm:$0xff]   ;;  %925 = vmatprep.subr.bf16.mxu0 %v967_v2  ;;  %v973_v10 = vld [vmem:[%s1178_s2 + $0x18] sm:$0xff]   ;;  %v975_v12 = vld [vmem:[%s1179_s0 + $0x8] sm:$0xff]  }
   0x4   :  { %926 = vmatpush3.bf16.msra.mxu0 %v967_v2  ;;  %949 = vmatprep.mubr.msk.bf16.mxu1 %vm423_vm1, %v968_v3  ;;  %v974_v8 = vld [vmem:[%s1179_s0] sm:$0xff]   ;;  %v978_v13 = vld [vmem:[%s1179_s0 + $0x10] sm:$0xff]   ;;  %v977_v14 = vld [vmem:[%s1178_s2 + $0x28] sm:$0xff]  }
   0x5   :  { %927 = vmatprep.subr.bf16.mxu0 %v970_v5  ;;  %931 = vmatprep.mubr.msk.bf16.mxu0 %vm100_vm2, %v974_v8  ;;  %v976_v11 = vld [vmem:[%s1178_s2 + $0x20] sm:$0xff]   ;;  %v980_v15 = vld [vmem:[%s1178_s2 + $0x30] sm:$0xff]   ;;  %v979_v16 = vld [vmem:[%s1179_s0 + $0x18] sm:$0xff]  }
   0x6   :  { %950 = vmatmul.mubr.msk.bf16.vlgmr.msra.gmra.mrb[0].mxu1 %vm423_vm1, %v969_v4  ;;  %v982_v17 = vld [vmem:[%s1179_s0 + $0x20] sm:$0xff]   ;;  %v981_v18 = vld [vmem:[%s1178_s2 + $0x38] sm:$0xff]   ;;  %v983_v19 = vld [vmem:[%s1179_s0 + $0x28] sm:$0xff]  }
   0x7   :  { %953 = vmatprep.mubr.msk.bf16.mxu1 %vm423_vm1, %v972_v7  ;;  %v984_v20 = vld [vmem:[%s1179_s0 + $0x30] sm:$0xff]   ;;  %v985_v21 = vld [vmem:[%s1179_s0 + $0x38] sm:$0xff]  }
   0x8   :  { %928 = vmatpush3.bf16.msra.mxu0 %v970_v5 }
   0x9   :  { %965 = vmatprep.subr.msk.bf16.mxu0 %vm125_vm0, %v971_v6 }
   0xc   :  { %930 = vmatpush3.bf16.msra.mxu0 %v127_v9 }
   0xe   :  { %954 = vmatmul.mubr.msk.bf16.gmra.mrb[4].mxu1 %vm423_vm1, %v973_v10 }
   0xf   :  { %957 = vmatprep.mubr.msk.bf16.mxu1 %vm423_vm1, %v976_v11  ;;  %932 = vmatmul.mubr.msk.bf16.vlgmr.msra.gmra.mrb[0].mxu0 %vm100_vm2, %v975_v12 }
  0x10   :  { %935 = vmatprep.mubr.msk.bf16.mxu0 %vm100_vm2, %v978_v13 }
  0x16   :  { %958 = vmatmul.mubr.msk.bf16.gmra.mrb[8].mxu1 %vm423_vm1, %v977_v14 }
  0x17   :  { %961 = vmatprep.mubr.msk.bf16.mxu1 %vm423_vm1, %v980_v15  ;;  %936 = vmatmul.mubr.msk.bf16.gmra.mrb[4].mxu0 %vm100_vm2, %v979_v16 }
  0x18   :  { %939 = vmatprep.mubr.msk.bf16.mxu0 %vm100_vm2, %v982_v17 }
  0x1e   :  { %962 = vmatmul.mubr.msk.bf16.gmra.mrb[12].mxu1 %vm423_vm1, %v981_v18 }
  0x1f   :  { %940 = vmatmul.mubr.msk.bf16.gmra.mrb[8].mxu0 %vm100_vm2, %v983_v19 }
  0x20   :  { %943 = vmatprep.mubr.msk.bf16.mxu0 %vm100_vm2, %v984_v20 }
  0x27   :  { %944 = vmatmul.mubr.msk.bf16.gmra.mrb[12].mxu0 %vm100_vm2, %v985_v21 }
  0xd9   :  { %v951_v22 = vpop.f32.mrb[0].mxu1 }
  0xda   :  { %v485_v23 = vpop.f32.mrb[1].mxu1  ;;  %v652_v28 = vmul.f32 %v951_v22, %v951_v22 }
  0xdb   :  { %v650_v24 = vmul.f32 %v485_v23, %v485_v23  ;;  %v952_v25 = vpop.f32.mrb[2].mxu1 }
  0xdc   :  { %v859_v26 = vpack.c.bf16 %v952_v25, %v951_v22  ;;  %v488_v27 = vpop.f32.mrb[3].mxu1  ;;  %v653_v32 = vmul.f32 %v952_v25, %v952_v25 }
  0xdd   :  { %v854_v29 = vpack.c.bf16 %v488_v27, %v485_v23  ;;  %v628_v30 = vadd.f32 %v488_v27, %v485_v23  ;;  %v651_v31 = vmul.f32 %v488_v27, %v488_v27 }
  0xde   :  { %898 = vst [vmem:[%s1180_s7 + $0x8] sm:$0xff] %v859_v26  }
  0xdf   :  { %855 = vst [vmem:[%s1180_s7] sm:$0xff] %v854_v29   ;;  %v629_v33 = vadd.f32 %v951_v22, %v628_v30  ;;  %v666_v34 = vadd.f32 %v651_v31, %v650_v24 }
  0xe1   :  { %v667_v35 = vadd.f32 %v666_v34, %v652_v28  ;;  %v955_v36 = vpop.f32.mrb[4].mxu1  ;;  %v630_v37 = vadd.f32 %v952_v25, %v629_v33 }
  0xe2   :  { %v501_v38 = vpop.f32.mrb[5].mxu1  ;;  %v933_v42 = vpop.f32.mrb[0].mxu0  ;;  %v656_v51 = vmul.f32 %v955_v36, %v955_v36 }
  0xe3   :  { %v631_v39 = vadd.f32 %v630_v37, %v501_v38  ;;  %v654_v40 = vmul.f32 %v501_v38, %v501_v38  ;;  %v668_v41 = vadd.f32 %v667_v35, %v653_v32  ;;  %v956_v43 = vpop.f32.mrb[6].mxu1  ;;  %v163_v45 = vpop.f32.mrb[1].mxu0  ;;  %v330_v62 = vmul.f32 %v933_v42, %v933_v42 }
  0xe4   :  { %v869_v44 = vpack.c.bf16 %v956_v43, %v955_v36  ;;  %v504_v46 = vpop.f32.mrb[7].mxu1  ;;  %v934_v50 = vpop.f32.mrb[2].mxu0  ;;  %v328_v52 = vmul.f32 %v163_v45, %v163_v45  ;;  %v657_v60 = vmul.f32 %v956_v43, %v956_v43 }
  0xe5   :  { %v669_v47 = vadd.f32 %v668_v41, %v654_v40  ;;  %v864_v48 = vpack.c.bf16 %v504_v46, %v501_v38  ;;  %v632_v49 = vadd.f32 %v631_v39, %v504_v46  ;;  %v655_v53 = vmul.f32 %v504_v46, %v504_v46  ;;  %v166_v55 = vpop.f32.mrb[3].mxu0 }
  0xe6   :  { %900 = vst [vmem:[%s1180_s7 + $0x18] sm:$0xff] %v869_v44   ;;  %v819_v54 = vpack.c.bf16 %v934_v50, %v933_v42  ;;  %v814_v57 = vpack.c.bf16 %v166_v55, %v163_v45  ;;  %v306_v58 = vadd.f32 %v166_v55, %v163_v45  ;;  %v329_v59 = vmul.f32 %v166_v55, %v166_v55 }
  0xe7   :  { %899 = vst [vmem:[%s1180_s7 + $0x10] sm:$0xff] %v864_v48   ;;  %v633_v56 = vadd.f32 %v955_v36, %v632_v49  ;;  %v670_v61 = vadd.f32 %v669_v47, %v655_v53  ;;  %v331_v4 = vmul.f32 %v934_v50, %v934_v50 }
  0xe8   :  { %891 = vst [vmem:[%s1181_s4 + $0x8] sm:$0xff] %v819_v54   ;;  %815 = vst [vmem:[%s1181_s4] sm:$0xff] %v814_v57   ;;  %v307_v63 = vadd.f32 %v933_v42, %v306_v58  ;;  %v344_v0 = vadd.f32 %v329_v59, %v328_v52 }
  0xe9   :  { %v959_v1 = vpop.f32.mrb[8].mxu1  ;;  %v634_v2 = vadd.f32 %v956_v43, %v633_v56  ;;  %v671_v3 = vadd.f32 %v670_v61, %v656_v51 }
  0xea   :  { %v517_v5 = vpop.f32.mrb[9].mxu1  ;;  %v345_v6 = vadd.f32 %v344_v0, %v330_v62  ;;  %v937_v9 = vpop.f32.mrb[4].mxu0  ;;  %v308_v11 = vadd.f32 %v934_v50, %v307_v63  ;;  %v660_v12 = vmul.f32 %v959_v1, %v959_v1 }
  0xeb   :  { %v635_v7 = vadd.f32 %v634_v2, %v517_v5  ;;  %v658_v8 = vmul.f32 %v517_v5, %v517_v5  ;;  %v960_v10 = vpop.f32.mrb[10].mxu1  ;;  %v672_v13 = vadd.f32 %v671_v3, %v657_v60  ;;  %v179_v15 = vpop.f32.mrb[5].mxu0  ;;  %v334_v36 = vmul.f32 %v937_v9, %v937_v9 }
  0xec   :  { %v879_v14 = vpack.c.bf16 %v960_v10, %v959_v1  ;;  %v520_v16 = vpop.f32.mrb[11].mxu1  ;;  %v309_v17 = vadd.f32 %v308_v11, %v179_v15  ;;  %v332_v18 = vmul.f32 %v179_v15, %v179_v15  ;;  %v346_v19 = vadd.f32 %v345_v6, %v331_v4  ;;  %v938_v21 = vpop.f32.mrb[6].mxu0 }
  0xed   :  { %v874_v20 = vpack.c.bf16 %v520_v16, %v517_v5  ;;  %v673_v22 = vadd.f32 %v672_v13, %v658_v8  ;;  %v636_v23 = vadd.f32 %v635_v7, %v520_v16  ;;  %v659_v24 = vmul.f32 %v520_v16, %v520_v16  ;;  %v182_v26 = vpop.f32.mrb[7].mxu0 }
  0xee   :  { %902 = vst [vmem:[%s1180_s7 + $0x28] sm:$0xff] %v879_v14   ;;  %v829_v25 = vpack.c.bf16 %v938_v21, %v937_v9  ;;  %v347_v27 = vadd.f32 %v346_v19, %v332_v18  ;;  %v824_v28 = vpack.c.bf16 %v182_v26, %v179_v15  ;;  %v310_v29 = vadd.f32 %v309_v17, %v182_v26 }
  0xef   :  { %901 = vst [vmem:[%s1180_s7 + $0x20] sm:$0xff] %v874_v20   ;;  %v661_v30 = vmul.f32 %v960_v10, %v960_v10  ;;  %v637_v31 = vadd.f32 %v959_v1, %v636_v23  ;;  %v674_v32 = vadd.f32 %v673_v22, %v659_v24  ;;  %v333_v33 = vmul.f32 %v182_v26, %v182_v26 }
  0xf0   :  { %893 = vst [vmem:[%s1181_s4 + $0x18] sm:$0xff] %v829_v25   ;;  %892 = vst [vmem:[%s1181_s4 + $0x10] sm:$0xff] %v824_v28   ;;  %v311_v34 = vadd.f32 %v937_v9, %v310_v29  ;;  %v335_v45 = vmul.f32 %v938_v21, %v938_v21 }
  0xf1   :  { %v963_v35 = vpop.f32.mrb[12].mxu1  ;;  %v675_v37 = vadd.f32 %v674_v32, %v660_v12  ;;  %v348_v38 = vadd.f32 %v347_v27, %v333_v33  ;;  %v638_v40 = vadd.f32 %v960_v10, %v637_v31 }
  0xf2   :  { %v533_v39 = vpop.f32.mrb[13].mxu1  ;;  %v941_v42 = vpop.f32.mrb[8].mxu0  ;;  %v312_v44 = vadd.f32 %v938_v21, %v311_v34  ;;  %v664_v60 = vmul.f32 %v963_v35, %v963_v35 }
  0xf3   :  { %v662_v41 = vmul.f32 %v533_v39, %v533_v39  ;;  %v964_v43 = vpop.f32.mrb[14].mxu1  ;;  %v349_v46 = vadd.f32 %v348_v38, %v334_v36  ;;  %v639_v47 = vadd.f32 %v638_v40, %v533_v39  ;;  %v676_v48 = vadd.f32 %v675_v37, %v661_v30  ;;  %v195_v49 = vpop.f32.mrb[9].mxu0 }
  0xf4   :  { %v536_v50 = vpop.f32.mrb[15].mxu1  ;;  %v889_v51 = vpack.c.bf16 %v964_v43, %v963_v35  ;;  %v313_v52 = vadd.f32 %v312_v44, %v195_v49  ;;  %v336_v53 = vmul.f32 %v195_v49, %v195_v49  ;;  %v942_v54 = vpop.f32.mrb[10].mxu0  ;;  %v665_v4 = vmul.f32 %v964_v43, %v964_v43 }
  0xf5   :  { %v677_v55 = vadd.f32 %v676_v48, %v662_v41  ;;  %v350_v56 = vadd.f32 %v349_v46, %v335_v45  ;;  %v884_v57 = vpack.c.bf16 %v536_v50, %v533_v39  ;;  %v640_v58 = vadd.f32 %v639_v47, %v536_v50  ;;  %v198_v59 = vpop.f32.mrb[11].mxu0 }
  0xf6   :  { %904 = vst [vmem:[%s1180_s7 + $0x38] sm:$0xff] %v889_v51   ;;  %v663_v61 = vmul.f32 %v536_v50, %v536_v50  ;;  %v839_v62 = vpack.c.bf16 %v942_v54, %v941_v42  ;;  %v834_v63 = vpack.c.bf16 %v198_v59, %v195_v49  ;;  %v314_v2 = vadd.f32 %v313_v52, %v198_v59 }
  0xf7   :  { %v351_v0 = vadd.f32 %v350_v56, %v336_v53  ;;  %903 = vst [vmem:[%s1180_s7 + $0x30] sm:$0xff] %v884_v57   ;;  %v641_v1 = vadd.f32 %v963_v35, %v640_v58  ;;  %v337_v3 = vmul.f32 %v198_v59, %v198_v59  ;;  %v338_v6 = vmul.f32 %v941_v42, %v941_v42 }
  0xf8   :  { %v678_v5 = vadd.f32 %v677_v55, %v663_v61  ;;  %895 = vst [vmem:[%s1181_s4 + $0x28] sm:$0xff] %v839_v62   ;;  %894 = vst [vmem:[%s1181_s4 + $0x20] sm:$0xff] %v834_v63   ;;  %v315_v8 = vadd.f32 %v941_v42, %v314_v2  ;;  %v339_v13 = vmul.f32 %v942_v54, %v942_v54 }
  0xf9   :  { %v642_v7 = vadd.f32 %v964_v43, %v641_v1  ;;  %v352_v9 = vadd.f32 %v351_v0, %v337_v3 }
  0xfa   :  { %v679_v10 = vadd.f32 %v678_v5, %v664_v60  ;;  %v945_v11 = vpop.f32.mrb[12].mxu0  ;;  %v316_v16 = vadd.f32 %v942_v54, %v315_v8 }
  0xfb   :  { %v643_v12 = vrot.slane %v642_v7, 4  ;;  %v353_v14 = vadd.f32 %v352_v9, %v338_v6  ;;  %v211_v15 = vpop.f32.mrb[13].mxu0  ;;  %v342_v33 = vmul.f32 %v945_v11, %v945_v11 }
  0xfc   :  { %v680_v17 = vadd.f32 %v679_v10, %v665_v4  ;;  %v340_v18 = vmul.f32 %v211_v15, %v211_v15  ;;  %v946_v19 = vpop.f32.mrb[14].mxu0  ;;  %v317_v21 = vadd.f32 %v316_v16, %v211_v15 }
  0xfd   :  { %v644_v20 = vadd.f32 %v643_v12, %v642_v7  ;;  %v354_v22 = vadd.f32 %v353_v14, %v339_v13  ;;  %v849_v23 = vpack.c.bf16 %v946_v19, %v945_v11  ;;  %v214_v24 = vpop.f32.mrb[15].mxu0  ;;  %v343_v38 = vmul.f32 %v946_v19, %v946_v19 }
  0xfe   :  { %v681_v25 = vrot.slane %v680_v17, 4  ;;  %v844_v26 = vpack.c.bf16 %v214_v24, %v211_v15  ;;  %v341_v27 = vmul.f32 %v214_v24, %v214_v24  ;;  %v318_v30 = vadd.f32 %v317_v21, %v214_v24 }
  0xff   :  { %v645_v28 = vrot.slane %v644_v20, 2  ;;  %v355_v29 = vadd.f32 %v354_v22, %v340_v18  ;;  %897 = vst [vmem:[%s1181_s4 + $0x38] sm:$0xff] %v849_v23  }
 0x100   :  { %v682_v31 = vadd.f32 %v681_v25, %v680_v17  ;;  %896 = vst [vmem:[%s1181_s4 + $0x30] sm:$0xff] %v844_v26   ;;  %v319_v34 = vadd.f32 %v945_v11, %v318_v30 }
 0x101   :  { %v646_v32 = vadd.f32 %v645_v28, %v644_v20  ;;  %v356_v35 = vadd.f32 %v355_v29, %v341_v27 }
 0x102   :  { %v683_v36 = vrot.slane %v682_v31, 2  ;;  %v320_v39 = vadd.f32 %v946_v19, %v319_v34 }
 0x103   :  { %v647_v37 = vrot.slane %v646_v32, 1  ;;  %v357_v40 = vadd.f32 %v356_v35, %v342_v33 }
 0x104   :  { %v684_v41 = vadd.f32 %v683_v36, %v682_v31  ;;  %v321_v43 = vrot.slane %v320_v39, 4 }
 0x105   :  { %v648_v42 = vadd.f32 %v647_v37, %v646_v32  ;;  %v358_v44 = vadd.f32 %v357_v40, %v343_v38 }
 0x106   :  { %v685_v45 = vrot.slane %v684_v41, 1  ;;  %v322_v46 = vadd.f32 %v321_v43, %v320_v39 }
 0x107   :  { %649 = vst [vmem:[%s1182_s8] sm:$0x1] %v648_v42  ;;  %v359_v47 = vrot.slane %v358_v44, 4 }
 0x108   :  { %v686_v48 = vadd.f32 %v685_v45, %v684_v41  ;;  %v323_v49 = vrot.slane %v322_v46, 2 }
 0x109   :  { %v360_v50 = vadd.f32 %v359_v47, %v358_v44 }
 0x10a   :  { %687 = vst [vmem:[%s1183_s9] sm:$0x1] %v686_v48  ;;  %v324_v51 = vadd.f32 %v323_v49, %v322_v46 }
 0x10b   :  { %v361_v52 = vrot.slane %v360_v50, 2 }
 0x10c   :  { %v325_v53 = vrot.slane %v324_v51, 1 }
 0x10d   :  { %v362_v54 = vadd.f32 %v361_v52, %v360_v50 }
 0x10e   :  { %v326_v55 = vadd.f32 %v325_v53, %v324_v51 }
 0x10f   :  { %v363_v56 = vrot.slane %v362_v54, 1 }
 0x110   :  { %327 = vst [vmem:[%s1184_s5] sm:$0x1] %v326_v55 }
 0x111   :  { %v364_v57 = vadd.f32 %v363_v56, %v362_v54 }
 0x113   :  { %365 = vst [vmem:[%s1185_s6] sm:$0x1] %v364_v57 }

// kernel: basic_block_forward.7
= control target key start
LH: loop header
LB: loop body
LE: loop exit
PB: predicated region body
PF: predicated region fallthrough
CT: control target
= control target key end

     0   :  { %s489_s0 = inlined_call_operand.vmem [shape: bf16[16,10,128], index: 0, kind: input, shape index: {}]   ;;  %s490_s1 = inlined_call_operand.vmem [shape: f32[1,1,128], index: 1, kind: input, shape index: {}]   ;;  %s491_s2 = inlined_call_operand.vmem [shape: f32[1,1,128], index: 2, kind: input, shape index: {}]   ;;  %s492_s3 = inlined_call_operand.vmem [shape: bf16[16,8,128], index: 3, kind: input, shape index: {}]   ;;  %s493_s4 = inlined_call_operand.vmem [shape: f32[1,1,128], index: 4, kind: input, shape index: {}]   ;;  %s494_s5 = inlined_call_operand.vmem [shape: f32[1,1,128], index: 5, kind: input, shape index: {}]   ;;  %s495_s6 = inlined_call_operand.vmem [shape: f32[16,8,128], index: 6, kind: output, shape index: {}]  }
   0x1   :  { %v23_v0 = vld [vmem:[%s489_s0] ss:$8 sps:$4 sm:$0xff]   ;;  %v25_v9 = vld [vmem:[%s489_s0 + $0x10] ss:$8 sps:$4 sm:$0xff]  }
   0x2   :  { %v315_v1 = vld [vmem:[%s490_s1] ss:$0 sm:$0xff]  ;;  %v39_v2 = vunpack.c.l.bf16 %v23_v0  ;;  %v40_v5 = vunpack.c.h.bf16 %v23_v0  ;;  %v267_v10 = vld [vmem:[%s492_s3 + $0x8] sm:$0xff]   ;;  %v41_v13 = vunpack.c.l.bf16 %v25_v9  ;;  %v268_v16 = vld [vmem:[%s492_s3 + $0x10] sm:$0xff]   ;;  %v42_v19 = vunpack.c.h.bf16 %v25_v9 }
   0x3   :  { %v236_v3 = vld [vmem:[%s492_s3] sm:$0xff]   ;;  %v241_v14 = vunpack.c.l.bf16 %v267_v10  ;;  %v242_v20 = vunpack.c.h.bf16 %v267_v10  ;;  %v245_v29 = vunpack.c.l.bf16 %v268_v16  ;;  %v29_v34 = vld [vmem:[%s489_s0 + $0x30] ss:$8 sps:$4 sm:$0xff]   ;;  %v246_v38 = vunpack.c.h.bf16 %v268_v16 }
   0x4   :  { %v323_v4 = vld [vmem:[%s493_s4] ss:$0 sm:$0xff]  ;;  %v237_v7 = vunpack.c.l.bf16 %v236_v3  ;;  %v238_v8 = vunpack.c.h.bf16 %v236_v3  ;;  %v62_v11 = vmul.f32 %v315_v1, %v39_v2  ;;  %v63_v12 = vmul.f32 %v315_v1, %v40_v5  ;;  %v269_v43 = vld [vmem:[%s492_s3 + $0x18] sm:$0xff]  }
   0x5   :  { %v328_v6 = vld [vmem:[%s491_s2] ss:$0 sm:$0xff]  ;;  %v64_v23 = vmul.f32 %v315_v1, %v41_v13  ;;  %v142_v24 = vmul.f32 %v241_v14, %v323_v4  ;;  %v65_v26 = vmul.f32 %v315_v1, %v42_v19  ;;  %v143_v27 = vmul.f32 %v242_v20, %v323_v4  ;;  %v33_v9 = vld [vmem:[%s489_s0 + $0x50] ss:$8 sps:$4 sm:$0xff]   ;;  %v271_v14 = vld [vmem:[%s492_s3 + $0x28] sm:$0xff]  }
   0x6   :  { %v27_v15 = vld [vmem:[%s489_s0 + $0x20] ss:$8 sps:$4 sm:$0xff]   ;;  %v140_v17 = vmul.f32 %v237_v7, %v323_v4  ;;  %v141_v18 = vmul.f32 %v238_v8, %v323_v4  ;;  %v85_v21 = vadd.f32 %v328_v6, %v62_v11  ;;  %v86_v22 = vadd.f32 %v328_v6, %v63_v12 }
   0x7   :  { %v353_v25 = vld [vmem:[%s494_s5] ss:$0 sm:$0xff]  ;;  %v43_v28 = vunpack.c.l.bf16 %v27_v15  ;;  %v87_v32 = vadd.f32 %v328_v6, %v64_v23  ;;  %v44_v33 = vunpack.c.h.bf16 %v27_v15  ;;  %v88_v35 = vadd.f32 %v328_v6, %v65_v26 }
   0x8   :  { %v156_v30 = vadd.f32 %v140_v17, %v85_v21  ;;  %v157_v31 = vadd.f32 %v141_v18, %v86_v22  ;;  %v144_v37 = vmul.f32 %v245_v29, %v323_v4  ;;  %v145_v46 = vmul.f32 %v246_v38, %v323_v4  ;;  %v31_v56 = vld [vmem:[%s489_s0 + $0x40] ss:$8 sps:$4 sm:$0xff]  }
   0x9   :  { %v66_v36 = vmul.f32 %v315_v1, %v43_v28  ;;  %v158_v41 = vadd.f32 %v142_v24, %v87_v32  ;;  %v67_v42 = vmul.f32 %v315_v1, %v44_v33  ;;  %v159_v44 = vadd.f32 %v143_v27, %v88_v35  ;;  %v270_v61 = vld [vmem:[%s492_s3 + $0x20] sm:$0xff]   ;;  %v272_v33 = vld [vmem:[%s492_s3 + $0x30] sm:$0xff]  }
   0xa   :  { %v179_v39 = vadd.f32 %v353_v25, %v156_v30  ;;  %v180_v40 = vadd.f32 %v353_v25, %v157_v31  ;;  %v45_v47 = vunpack.c.l.bf16 %v29_v34  ;;  %v249_v55 = vunpack.c.l.bf16 %v269_v43  ;;  %v35_v28 = vld [vmem:[%s489_s0 + $0x60] ss:$8 sps:$4 sm:$0xff]  }
   0xb   :  { %v89_v45 = vadd.f32 %v328_v6, %v66_v36  ;;  %v181_v50 = vadd.f32 %v353_v25, %v158_v41  ;;  %v90_v51 = vadd.f32 %v328_v6, %v67_v42  ;;  %v182_v52 = vadd.f32 %v353_v25, %v159_v44 }
   0xc   :  { %v195_v48 = vmax.f32 %v179_v39, 0.0  ;;  %v196_v49 = vmax.f32 %v180_v40, 0.0  ;;  %v68_v54 = vmul.f32 %v315_v1, %v45_v47  ;;  %v46_v59 = vunpack.c.h.bf16 %v29_v34 }
   0xd   :  { %v160_v53 = vadd.f32 %v144_v37, %v89_v45  ;;  %v197_v57 = vmax.f32 %v181_v50, 0.0  ;;  %v161_v58 = vadd.f32 %v145_v46, %v90_v51  ;;  %v250_v60 = vunpack.c.h.bf16 %v269_v43  ;;  %v37_v50 = vld [vmem:[%s489_s0 + $0x70] ss:$8 sps:$4 sm:$0xff]  }
   0xe   :  { %211 = vst [vmem:[%s495_s6] sm:$0xff] %v195_v48  ;;  %212 = vst [vmem:[%s495_s6 + $0x8] sm:$0xff] %v196_v49  ;;  %v198_v62 = vmax.f32 %v182_v52, 0.0  ;;  %v91_v0 = vadd.f32 %v328_v6, %v68_v54  ;;  %v146_v2 = vmul.f32 %v249_v55, %v323_v4  ;;  %v69_v5 = vmul.f32 %v315_v1, %v46_v59  ;;  %v273_v51 = vld [vmem:[%s492_s3 + $0x38] sm:$0xff]  }
   0xf   :  { %v183_v63 = vadd.f32 %v353_v25, %v160_v53  ;;  %213 = vst [vmem:[%s495_s6 + $0x10] sm:$0xff] %v197_v57  ;;  %v184_v3 = vadd.f32 %v353_v25, %v161_v58  ;;  %v147_v7 = vmul.f32 %v250_v60, %v323_v4  ;;  %v47_v8 = vunpack.c.l.bf16 %v31_v56 }
  0x10   :  { %214 = vst [vmem:[%s495_s6 + $0x18] sm:$0xff] %v198_v62  ;;  %v162_v11 = vadd.f32 %v146_v2, %v91_v0  ;;  %v253_v12 = vunpack.c.l.bf16 %v270_v61  ;;  %v48_v13 = vunpack.c.h.bf16 %v31_v56  ;;  %v92_v16 = vadd.f32 %v328_v6, %v69_v5 }
  0x11   :  { %v199_v10 = vmax.f32 %v183_v63, 0.0  ;;  %v200_v15 = vmax.f32 %v184_v3, 0.0  ;;  %v70_v17 = vmul.f32 %v315_v1, %v47_v8  ;;  %v254_v18 = vunpack.c.h.bf16 %v270_v61 }
  0x12   :  { %v185_v19 = vadd.f32 %v353_v25, %v162_v11  ;;  %v148_v20 = vmul.f32 %v253_v12, %v323_v4  ;;  %v71_v21 = vmul.f32 %v315_v1, %v48_v13  ;;  %v49_v22 = vunpack.c.l.bf16 %v33_v9 }
  0x13   :  { %215 = vst [vmem:[%s495_s6 + $0x20] sm:$0xff] %v199_v10  ;;  %216 = vst [vmem:[%s495_s6 + $0x28] sm:$0xff] %v200_v15  ;;  %v163_v23 = vadd.f32 %v147_v7, %v92_v16  ;;  %v93_v24 = vadd.f32 %v328_v6, %v70_v17  ;;  %v149_v26 = vmul.f32 %v254_v18, %v323_v4  ;;  %v257_v27 = vunpack.c.l.bf16 %v271_v14 }
  0x14   :  { %v201_v29 = vmax.f32 %v185_v19, 0.0  ;;  %v94_v30 = vadd.f32 %v328_v6, %v71_v21  ;;  %v72_v31 = vmul.f32 %v315_v1, %v49_v22  ;;  %v50_v32 = vunpack.c.h.bf16 %v33_v9 }
  0x15   :  { %v186_v34 = vadd.f32 %v353_v25, %v163_v23  ;;  %v164_v35 = vadd.f32 %v148_v20, %v93_v24  ;;  %v150_v36 = vmul.f32 %v257_v27, %v323_v4  ;;  %v258_v37 = vunpack.c.h.bf16 %v271_v14 }
  0x16   :  { %217 = vst [vmem:[%s495_s6 + $0x30] sm:$0xff] %v201_v29  ;;  %v165_v38 = vadd.f32 %v149_v26, %v94_v30  ;;  %v95_v39 = vadd.f32 %v328_v6, %v72_v31  ;;  %v73_v40 = vmul.f32 %v315_v1, %v50_v32  ;;  %v51_v41 = vunpack.c.l.bf16 %v35_v28 }
  0x17   :  { %v202_v42 = vmax.f32 %v186_v34, 0.0  ;;  %v187_v43 = vadd.f32 %v353_v25, %v164_v35  ;;  %v151_v44 = vmul.f32 %v258_v37, %v323_v4  ;;  %v261_v45 = vunpack.c.l.bf16 %v272_v33 }
  0x18   :  { %v188_v46 = vadd.f32 %v353_v25, %v165_v38  ;;  %v166_v47 = vadd.f32 %v150_v36, %v95_v39  ;;  %v96_v48 = vadd.f32 %v328_v6, %v73_v40  ;;  %v74_v49 = vmul.f32 %v315_v1, %v51_v41 }
  0x19   :  { %218 = vst [vmem:[%s495_s6 + $0x38] sm:$0xff] %v202_v42  ;;  %v203_v52 = vmax.f32 %v187_v43, 0.0  ;;  %v152_v53 = vmul.f32 %v261_v45, %v323_v4  ;;  %v52_v54 = vunpack.c.h.bf16 %v35_v28  ;;  %v262_v55 = vunpack.c.h.bf16 %v272_v33 }
  0x1a   :  { %v204_v56 = vmax.f32 %v188_v46, 0.0  ;;  %v189_v57 = vadd.f32 %v353_v25, %v166_v47  ;;  %v167_v58 = vadd.f32 %v151_v44, %v96_v48  ;;  %v97_v59 = vadd.f32 %v328_v6, %v74_v49 }
  0x1b   :  { %219 = vst [vmem:[%s495_s6 + $0x40] sm:$0xff] %v203_v52  ;;  %v75_v60 = vmul.f32 %v315_v1, %v52_v54  ;;  %v153_v61 = vmul.f32 %v262_v55, %v323_v4  ;;  %v53_v62 = vunpack.c.l.bf16 %v37_v50  ;;  %v265_v63 = vunpack.c.l.bf16 %v273_v51 }
  0x1c   :  { %220 = vst [vmem:[%s495_s6 + $0x48] sm:$0xff] %v204_v56  ;;  %v205_v0 = vmax.f32 %v189_v57, 0.0  ;;  %v190_v2 = vadd.f32 %v353_v25, %v167_v58  ;;  %v168_v3 = vadd.f32 %v152_v53, %v97_v59  ;;  %v54_v5 = vunpack.c.h.bf16 %v37_v50 }
  0x1d   :  { %v98_v7 = vadd.f32 %v328_v6, %v75_v60  ;;  %v76_v8 = vmul.f32 %v315_v1, %v53_v62  ;;  %v154_v9 = vmul.f32 %v265_v63, %v323_v4  ;;  %v266_v10 = vunpack.c.h.bf16 %v273_v51 }
  0x1e   :  { %221 = vst [vmem:[%s495_s6 + $0x50] sm:$0xff] %v205_v0  ;;  %v206_v11 = vmax.f32 %v190_v2, 0.0  ;;  %v191_v12 = vadd.f32 %v353_v25, %v168_v3  ;;  %v77_v13 = vmul.f32 %v315_v1, %v54_v5 }
  0x1f   :  { %v169_v14 = vadd.f32 %v153_v61, %v98_v7  ;;  %v99_v15 = vadd.f32 %v328_v6, %v76_v8  ;;  %v155_v16 = vmul.f32 %v266_v10, %v323_v4 }
  0x20   :  { %222 = vst [vmem:[%s495_s6 + $0x58] sm:$0xff] %v206_v11  ;;  %v207_v17 = vmax.f32 %v191_v12, 0.0  ;;  %v100_v18 = vadd.f32 %v328_v6, %v77_v13 }
  0x21   :  { %v192_v19 = vadd.f32 %v353_v25, %v169_v14  ;;  %v170_v20 = vadd.f32 %v154_v9, %v99_v15 }
  0x22   :  { %223 = vst [vmem:[%s495_s6 + $0x60] sm:$0xff] %v207_v17  ;;  %v171_v1 = vadd.f32 %v155_v16, %v100_v18 }
  0x23   :  { %v208_v21 = vmax.f32 %v192_v19, 0.0  ;;  %v193_v22 = vadd.f32 %v353_v25, %v170_v20 }
  0x24   :  { %v194_v4 = vadd.f32 %v353_v25, %v171_v1 }
  0x25   :  { %224 = vst [vmem:[%s495_s6 + $0x68] sm:$0xff] %v208_v21  ;;  %v209_v23 = vmax.f32 %v193_v22, 0.0 }
  0x26   :  { %v210_v24 = vmax.f32 %v194_v4, 0.0 }
  0x27   :  { %225 = vst [vmem:[%s495_s6 + $0x70] sm:$0xff] %v209_v23 }
  0x28   :  { %226 = vst [vmem:[%s495_s6 + $0x78] sm:$0xff] %v210_v24 }

// kernel: basic_block_forward.6
= control target key start
LH: loop header
LB: loop body
LE: loop exit
PB: predicated region body
PF: predicated region fallthrough
CT: control target
= control target key end

     0   :  { %s3221_s18 = smov 0   ;;  %s3780_s0 = inlined_call_operand.vmem [shape: bf16[2,108,128], index: 0, kind: input, shape index: {}]   ;;  %s3781_s1 = inlined_call_operand.vmem [shape: bf16[9,128,128], index: 1, kind: input, shape index: {}]   ;;  %s3782_s2 = inlined_call_operand.vmem [shape: f32[1,80,1], index: 2, kind: input, shape index: {}]   ;;  %s3783_s3 = inlined_call_operand.vmem [shape: bf16[2,80,128], index: 3, kind: output, shape index: {0}]   ;;  %s3784_s4 = inlined_call_operand.vmem [shape: f32[2,1,128], index: 4, kind: output, shape index: {1}]   ;;  %s3785_s5 = inlined_call_operand.vmem [shape: f32[2,1,128], index: 5, kind: output, shape index: {2}]  }
   0x1 LB: > { %s2198_s19 = sadd.s32 4294967295, %s3186_s18   ;;  %p2202_p0 = scmp.ge.s32.totalorder %s3186_s18, 1  ;;  %s3186_s18 = sphi %s3221_s18, %s16_s18  }
   0x2   : > { %p192_p1 = scmp.lt.s32.totalorder %s3186_s18, 3 }
   0x4   : > { %p193_p2 = pnand %p2202_p0, %p192_p1 }
   0x5   : > { %v3103_v0 = vld [vmem:[%s3781_s1] sm:$0xff] (!%p193_p2)   ;;  %v3188_v1 = vmov (!%p193_p2), 0.0   ;;  %v3105_v3 = vld [vmem:[%s3781_s1 + $0x8] sm:$0xff] (!%p193_p2)   ;;  %vm3189_vm0 = vmmov (!%p193_p2), 0   ;;  %p226_p3 = scmp.lt.s32.totalorder (!%p193_p2), %s2198_s19, 1  ;;  %v3107_v5 = vld [vmem:[%s3781_s1 + $0x10] sm:$0xff] (!%p193_p2)  }
   0x6   : > { %196 = sbr.rel (%p193_p2) target bundleno = 459 (0x1cb), region = 32  ;;  %2602 = vmatprep.subr.bf16.mxu1 (!%p193_p2), %v3188_v1  ;;  %2746 = vmatprep.subr.bf16.mxu0 (!%p193_p2), %v3188_v1  ;;  %v3104_v2 = vld [vmem:[%s3781_s1 + $0x100] sm:$0xff] (!%p193_p2)   ;;  %v3106_v4 = vld [vmem:[%s3781_s1 + $0x108] sm:$0xff] (!%p193_p2)   ;;  %v3108_v6 = vld [vmem:[%s3781_s1 + $0x110] sm:$0xff] (!%p193_p2)  }
   0x7   : > { %2603 = vmatpush3.bf16.msra.mxu1 (!%p193_p2), %v3103_v0  ;;  %2618 = vmatprep.mubr.msk.bf16.mxu1 (!%p193_p2), %vm3189_vm0, %v3188_v1  ;;  %v3109_v7 = vld [vmem:[%s3781_s1 + $0x18] sm:$0xff] (!%p193_p2)   ;;  %v3111_v9 = vld [vmem:[%s3781_s1 + $0x20] sm:$0xff] (!%p193_p2)   ;;  %v3113_v15 = vld [vmem:[%s3781_s1 + $0x28] sm:$0xff] (!%p193_p2)  }
   0x8   : > { %2747 = vmatpush3.bf16.msra.mxu0 (!%p193_p2), %v3104_v2  ;;  %2604 = vmatprep.subr.bf16.mxu1 (!%p193_p2), %v3188_v1  ;;  %v3110_v8 = vld [vmem:[%s3781_s1 + $0x118] sm:$0xff] (!%p193_p2)   ;;  %v3112_v10 = vld [vmem:[%s3781_s1 + $0x120] sm:$0xff] (!%p193_p2)   ;;  %v3114_v18 = vld [vmem:[%s3781_s1 + $0x128] sm:$0xff] (!%p193_p2)  }
   0x9   : > { %2748 = vmatprep.subr.bf16.mxu0 (!%p193_p2), %v3188_v1  ;;  %2762 = vmatprep.mubr.msk.bf16.mxu0 (!%p193_p2), %vm3189_vm0, %v3188_v1  ;;  %v3115_v22 = vld [vmem:[%s3781_s1 + $0x30] sm:$0xff] (!%p193_p2)   ;;  %v3117_v27 = vld [vmem:[%s3781_s1 + $0x38] sm:$0xff] (!%p193_p2)   ;;  %v3120_v36 = vld [vmem:[%s3781_s1 + $0x140] sm:$0xff] (!%p193_p2)  }
   0xa   : > { %v3116_v23 = vld [vmem:[%s3781_s1 + $0x130] sm:$0xff] (!%p193_p2)   ;;  %v3118_v28 = vld [vmem:[%s3781_s1 + $0x138] sm:$0xff] (!%p193_p2)   ;;  %v3123_v37 = vld [vmem:[%s3781_s1 + $0x40] sm:$0xff] (!%p193_p2)  }
   0xb   : > { %2605 = vmatpush3.bf16.msra.mxu1 (!%p193_p2), %v3105_v3  ;;  %v3121_v38 = vld [vmem:[%s3781_s1 + $0x148] sm:$0xff] (!%p193_p2)   ;;  %v3124_v47 = vld [vmem:[%s3781_s1 + $0x150] sm:$0xff] (!%p193_p2)   ;;  %v3127_v50 = vld [vmem:[%s3781_s1 + $0x158] sm:$0xff] (!%p193_p2)  }
   0xc   : > { %2749 = vmatpush3.bf16.msra.mxu0 (!%p193_p2), %v3106_v4  ;;  %2606 = vmatprep.subr.bf16.mxu1 (!%p193_p2), %v3188_v1  ;;  %v3125_v44 = vld [vmem:[%s3781_s1 + $0x48] sm:$0xff] (!%p193_p2)   ;;  %v3128_v48 = vld [vmem:[%s3781_s1 + $0x50] sm:$0xff] (!%p193_p2)   ;;  %v3129_v52 = vld [vmem:[%s3781_s1 + $0x58] sm:$0xff] (!%p193_p2)  }
   0xd   : > { %s3787_s19 = smov (!%p226_p3, %s2198_s19), 1  ;;  %2750 = vmatprep.subr.bf16.mxu0 %v3188_v1  ;;  %v3130_v55 = vld [vmem:[%s3781_s1 + $0x160] sm:$0xff]   ;;  %v3133_v57 = vld [vmem:[%s3781_s1 + $0x168] sm:$0xff]   ;;  %v3135_v63 = vld [vmem:[%s3781_s1 + $0x170] sm:$0xff]  }
   0xe   : > { %s3088_s7 = smul.u32 56, %s3787_s19  ;;  %v3132_v56 = vld [vmem:[%s3781_s1 + $0x60] sm:$0xff]   ;;  %v3134_v60 = vld [vmem:[%s3781_s1 + $0x68] sm:$0xff]   ;;  %v3137_v0 = vld [vmem:[%s3781_s1 + $0x70] sm:$0xff]   ;;  %s238_s9 = scalar_lea.vmem %s3784_s4, %s3787_s19 }
   0xf   : > { %2607 = vmatpush3.bf16.msra.mxu1 %v3107_v5  ;;  %v3138_v3 = vld [vmem:[%s3781_s1 + $0x178] sm:$0xff]   ;;  %s3089_s29 = smul.u32 40, %s3787_s19  ;;  %s241_s12 = scalar_lea.vmem %s3785_s5, %s3787_s19 }
  0x10   : > { %2751 = vmatpush3.bf16.msra.mxu0 %v3108_v6  ;;  %2608 = vmatprep.subr.bf16.mxu1 %v3188_v1  ;;  %s3271_s14 = scalar_lea.vmem %s3780_s0, %s3088_s7  ;;  %v3139_v5 = vld [vmem:[%s3781_s1 + $0x78] sm:$0xff]  }
  0x11   : > { %2752 = vmatprep.subr.bf16.mxu0 %v3188_v1  ;;  %v2428_v11 = vld [vmem:[%s3271_s14] sm:$0xff]   ;;  %v2476_v14 = vld [vmem:[%s3271_s14 + $0x8] sm:$0xff]   ;;  %v2477_v19 = vld [vmem:[%s3271_s14 + $0x10] sm:$0xff]   ;;  %s3751_s7 = scalar_lea.vmem %s3783_s3, %s3089_s29 }
  0x12   : > { %v2429_v12 = vunpack.c.l.bf16 %v2428_v11  ;;  %v2430_v13 = vunpack.c.h.bf16 %v2428_v11  ;;  %v2433_v16 = vunpack.c.l.bf16 %v2476_v14  ;;  %v2434_v17 = vunpack.c.h.bf16 %v2476_v14  ;;  %v2478_v24 = vld [vmem:[%s3271_s14 + $0x18] sm:$0xff]   ;;  %v2479_v31 = vld [vmem:[%s3271_s14 + $0x20] sm:$0xff]   ;;  %v2480_v40 = vld [vmem:[%s3271_s14 + $0x28] sm:$0xff]  }
  0x13   : > { %2609 = vmatpush3.bf16.msra.mxu1 %v3109_v7  ;;  %v2437_v20 = vunpack.c.l.bf16 %v2477_v19  ;;  %v2438_v21 = vunpack.c.h.bf16 %v2477_v19  ;;  %v2441_v25 = vunpack.c.l.bf16 %v2478_v24  ;;  %v2442_v26 = vunpack.c.h.bf16 %v2478_v24  ;;  %v3119_v32 = vld [vmem:[%s3271_s14] sm:$0xff]  ;;  %v3122_v45 = vld [vmem:[%s3271_s14 + $0x8] sm:$0xff]  ;;  %v3126_v53 = vld [vmem:[%s3271_s14 + $0x10] sm:$0xff] }
  0x14   : > { %2753 = vmatpush3.bf16.msra.mxu0 %v3110_v8  ;;  %2610 = vmatprep.subr.bf16.mxu1 %v3188_v1  ;;  %271 = vst [vmem:[#allocation2] sm:$0xff] %v2429_v12  ;;  %272 = vst [vmem:[#allocation2 + $0x8] sm:$0xff] %v2430_v13  ;;  %v2445_v33 = vunpack.c.l.bf16 %v2479_v31  ;;  %v2446_v34 = vunpack.c.h.bf16 %v2479_v31  ;;  %v2449_v42 = vunpack.c.l.bf16 %v2480_v40  ;;  %v2450_v43 = vunpack.c.h.bf16 %v2480_v40  ;;  %v3131_v61 = vld [vmem:[%s3271_s14 + $0x18] sm:$0xff]  ;;  %v3136_v6 = vld [vmem:[%s3271_s14 + $0x20] sm:$0xff] }
  0x15   : > { %2754 = vmatprep.subr.bf16.mxu0 %v3188_v1  ;;  %273 = vst [vmem:[#allocation2 + $0x10] sm:$0xff] %v2433_v16  ;;  %274 = vst [vmem:[#allocation2 + $0x18] sm:$0xff] %v2434_v17  ;;  %v3140_v14 = vld [vmem:[%s3781_s1 + $0x180] sm:$0xff]   ;;  %v3141_v16 = vld [vmem:[%s3781_s1 + $0x188] sm:$0xff]  }
  0x16   : > { %275 = vst [vmem:[#allocation2 + $0x20] sm:$0xff] %v2437_v20  ;;  %276 = vst [vmem:[#allocation2 + $0x28] sm:$0xff] %v2438_v21  ;;  %v3144_v21 = vld [vmem:[%s3781_s1 + $0x88] sm:$0xff]   ;;  %v255_v24 = vld [vmem:[%s3271_s14 + $0x30] sm:$0xf] }
  0x17   : > { %2611 = vmatpush3.bf16.msra.mxu1 %v3111_v9  ;;  %277 = vst [vmem:[#allocation2 + $0x30] sm:$0xff] %v2441_v25  ;;  %278 = vst [vmem:[#allocation2 + $0x38] sm:$0xff] %v2442_v26  ;;  %v3143_v25 = vld [vmem:[%s3781_s1 + $0x190] sm:$0xff]   ;;  %v269_v26 = vunpack.c.l.bf16 %v255_v24  ;;  %v3164_v24 = vld [vmem:[%s3781_s1 + $0x1e0] sm:$0xff]  }
  0x18   : > { %2755 = vmatpush3.bf16.msra.mxu0 %v3112_v10  ;;  %2612 = vmatprep.subr.bf16.mxu1 %v3188_v1  ;;  %279 = vst [vmem:[#allocation2 + $0x40] sm:$0xff] %v2445_v33  ;;  %280 = vst [vmem:[#allocation2 + $0x48] sm:$0xff] %v2446_v34  ;;  %v3147_v33 = vld [vmem:[%s3781_s1 + $0x98] sm:$0xff]  }
  0x19   : > { %2756 = vmatprep.subr.bf16.mxu0 %v3188_v1  ;;  %281 = vst [vmem:[#allocation2 + $0x50] sm:$0xff] %v2449_v42  ;;  %282 = vst [vmem:[#allocation2 + $0x58] sm:$0xff] %v2450_v43  ;;  %v3150_v43 = vld [vmem:[%s3781_s1 + $0x1a8] sm:$0xff]  }
  0x1a   : > { %283 = vst [vmem:[#allocation2 + $0x60] sm:$0xff] %v269_v26 }
  0x1b   : > { %2613 = vmatpush3.bf16.msra.mxu1 %v3113_v15  ;;  %v447_v8 = vld [vmem:[#allocation2 + $0x1] sm:$0xff] }
  0x1c   : > { %2757 = vmatpush3.bf16.msra.mxu0 %v3114_v18  ;;  %2614 = vmatprep.subr.bf16.mxu1 %v3188_v1  ;;  %v996_v29 = vld [vmem:[#allocation2 + $0xb] sm:$0xff]  ;;  %v997_v30 = vld [vmem:[#allocation2 + $0x13] sm:$0xff]  ;;  %v3142_v15 = vld [vmem:[%s3781_s1 + $0x80] sm:$0xff]  }
  0x1d   : > { %2758 = vmatprep.subr.bf16.mxu0 %v3188_v1  ;;  %v1006_v35 = vpack.c.bf16 %v997_v30, %v996_v29  ;;  %v998_v39 = vld [vmem:[#allocation2 + $0x1b] sm:$0xff]  ;;  %v999_v41 = vld [vmem:[#allocation2 + $0x23] sm:$0xff]  ;;  %v1179_v10 = vld [vmem:[#allocation2 + $0xc] sm:$0xff] }
  0x1e   : > { %v1007_v46 = vpack.c.bf16 %v999_v41, %v998_v39  ;;  %v1000_v49 = vld [vmem:[#allocation2 + $0x2b] sm:$0xff]  ;;  %v1001_v51 = vld [vmem:[#allocation2 + $0x33] sm:$0xff]  ;;  %v3416_v19 = vld [vmem:[#allocation2 + $0x1c] sm:$0xff] }
  0x1f   : > { %2615 = vmatpush3.bf16.msra.mxu1 %v3115_v22  ;;  %v1008_v54 = vpack.c.bf16 %v1001_v51, %v1000_v49  ;;  %v1002_v58 = vld [vmem:[#allocation2 + $0x3b] sm:$0xff]  ;;  %v1003_v59 = vld [vmem:[#allocation2 + $0x43] sm:$0xff]  ;;  %v449_v17 = vld [vmem:[#allocation2 + $0x11] sm:$0xff] }
  0x20   : > { %2759 = vmatpush3.bf16.msra.mxu0 %v3116_v23  ;;  %2616 = vmatprep.subr.bf16.mxu1 %v3188_v1  ;;  %v1009_v62 = vpack.c.bf16 %v1003_v59, %v1002_v58  ;;  %v1004_v2 = vld [vmem:[#allocation2 + $0x4b] sm:$0xff]  ;;  %v1005_v4 = vld [vmem:[#allocation2 + $0x53] sm:$0xff]  ;;  %v3466_v41 = vld [vmem:[#allocation2 + $0x3c] sm:$0xff] }
  0x21   : > { %2760 = vmatprep.subr.bf16.mxu0 %v3188_v1  ;;  %v1010_v7 = vpack.c.bf16 %v1005_v4, %v1004_v2  ;;  %v448_v9 = vld [vmem:[#allocation2 + $0x9] sm:$0xff]  ;;  %v3402_v11 = vld [vmem:[#allocation2 + $0x14] sm:$0xff]  ;;  %v455_v49 = vld [vmem:[#allocation2 + $0x41] sm:$0xff] }
  0x22   : > { %v457_v12 = vpack.c.bf16 %v448_v9, %v447_v8  ;;  %v1189_v13 = vpack.c.bf16 %v3402_v11, %v1179_v10  ;;  %v450_v18 = vld [vmem:[#allocation2 + $0x19] sm:$0xff]  ;;  %v3420_v20 = vld [vmem:[#allocation2 + $0x24] sm:$0xff]  ;;  %v3438_v30 = vld [vmem:[#allocation2 + $0x2c] sm:$0xff] }
  0x23   : > { %2617 = vmatpush3.bf16.msra.mxu1 %v3117_v27  ;;  %v458_v22 = vpack.c.bf16 %v450_v18, %v449_v17  ;;  %v1190_v23 = vpack.c.bf16 %v3420_v20, %v3416_v19  ;;  %v451_v27 = vld [vmem:[#allocation2 + $0x21] sm:$0xff]  ;;  %v452_v29 = vld [vmem:[#allocation2 + $0x29] sm:$0xff]  ;;  %v3442_v31 = vld [vmem:[#allocation2 + $0x34] sm:$0xff] }
  0x24   : > { %2761 = vmatpush3.bf16.msra.mxu0 %v3118_v28  ;;  %2638 = vmatprep.subr.bf16.mxu1 %v3188_v1  ;;  %v3146_v28 = vld [vmem:[%s3781_s1 + $0x90] sm:$0xff]   ;;  %v459_v34 = vpack.c.bf16 %v452_v29, %v451_v27  ;;  %v454_v40 = vld [vmem:[#allocation2 + $0x39] sm:$0xff]  ;;  %v3470_v42 = vld [vmem:[#allocation2 + $0x44] sm:$0xff] }
  0x25   : > { %2782 = vmatprep.subr.bf16.mxu0 %v3188_v1  ;;  %v453_v39 = vld [vmem:[#allocation2 + $0x31] sm:$0xff]  ;;  %v1972_v59 = vld [vmem:[%s3782_s2 + $0x8] sm:$0xff]  ;;  %v3156_v4 = vld [vmem:[%s3781_s1 + $0x1c0] sm:$0xff]  }
  0x26   : > { %2619 = vmatmul.mubr.bf16.vlgmr.msra.gmra.mrb[0].mxu1 %v3119_v32  ;;  %v3145_v32 = vld [vmem:[%s3781_s1 + $0x198] sm:$0xff]   ;;  %v3492_v51 = vld [vmem:[#allocation2 + $0x4c] sm:$0xff]  ;;  %v1979_v18 = vld [vmem:[%s3782_s2 + $0x40] sm:$0xff] }
  0x27   : > { %2763 = vmatmul.mubr.bf16.vlgmr.msra.gmra.mrb[0].mxu0 %v1006_v35  ;;  %2622 = vmatprep.mubr.msk.bf16.mxu1 %vm3189_vm0, %v3188_v1  ;;  %v3190_v35 = vmov 0   ;;  %v1976_v2 = vld [vmem:[%s3782_s2 + $0x28] sm:$0xff]  ;;  %v1977_v8 = vld [vmem:[%s3782_s2 + $0x30] sm:$0xff]  ;;  %v1978_v10 = vld [vmem:[%s3782_s2 + $0x38] sm:$0xff] }
  0x28   : > { %2783 = vmatpush3.bf16.msra.mxu0 %v3120_v36  ;;  %2766 = vmatprep.mubr.msk.bf16.mxu0 %vm3189_vm0, %v3188_v1  ;;  %v1191_v36 = vpack.c.bf16 %v3442_v31, %v3438_v30  ;;  %v3157_v9 = vld [vmem:[%s3781_s1 + $0x1c8] sm:$0xff]   ;;  %v3613_v26 = vld [vmem:[#allocation2 + $0x32] sm:$0xff]  ;;  %v3615_v27 = vld [vmem:[#allocation2 + $0x3a] sm:$0xff] }
  0x29   : > { %2784 = vmatprep.subr.bf16.mxu0 %v3188_v1  ;;  %2639 = vmatpush3.bf16.msra.mxu1 %v3123_v37  ;;  %v3148_v37 = vld [vmem:[%s3781_s1 + $0x1a0] sm:$0xff]   ;;  %v3581_v17 = vld [vmem:[#allocation2 + $0x2a] sm:$0xff] }
  0x2a   : > { %2640 = vmatprep.subr.bf16.mxu1 %v3188_v1  ;;  %3101 = vset.pattern.permute.xlu0 %v3190_v35  ;;  %v3167_v29 = vld [vmem:[%s3781_s1 + $0xe8] sm:$0xff]  }
  0x2b   : > { %3102 = vset.pattern.permute.xlu1 %v3190_v35  ;;  %v3643_v35 = vld [vmem:[#allocation2 + $0x4a] sm:$0xff] }
  0x2c   : > { %2785 = vmatpush3.bf16.msra.mxu0 %v3121_v38  ;;  %v3149_v38 = vld [vmem:[%s3781_s1 + $0xa0] sm:$0xff]  }
  0x2d   : > { %2786 = vmatprep.subr.bf16.mxu0 %v3188_v1  ;;  %2641 = vmatpush3.bf16.msra.mxu1 %v3125_v44  ;;  %v3151_v44 = vld [vmem:[%s3781_s1 + $0xa8] sm:$0xff]  }
  0x2e   : > { %2623 = vmatmul.mubr.bf16.gmra.mrb[4].mxu1 %v3122_v45  ;;  %2642 = vmatprep.subr.bf16.mxu1 %v3188_v1  ;;  %v460_v45 = vpack.c.bf16 %v454_v40, %v453_v39 }
  0x2f   : > { %2767 = vmatmul.mubr.bf16.gmra.mrb[4].mxu0 %v1007_v46  ;;  %2626 = vmatprep.mubr.msk.bf16.mxu1 %vm3189_vm0, %v3188_v1  ;;  %v1192_v46 = vpack.c.bf16 %v3470_v42, %v3466_v41 }
  0x30   : > { %2787 = vmatpush3.bf16.msra.mxu0 %v3124_v47  ;;  %2770 = vmatprep.mubr.msk.bf16.mxu0 %vm3189_vm0, %v3188_v1  ;;  %v3152_v47 = vld [vmem:[%s3781_s1 + $0x1b0] sm:$0xff]  }
  0x31   : > { %2788 = vmatprep.subr.bf16.mxu0 %v3188_v1  ;;  %2643 = vmatpush3.bf16.msra.mxu1 %v3128_v48  ;;  %v3153_v48 = vld [vmem:[%s3781_s1 + $0xb0] sm:$0xff]  }
  0x32   : > { %2644 = vmatprep.subr.bf16.mxu1 %v3188_v1 }
  0x34   : > { %2789 = vmatpush3.bf16.msra.mxu0 %v3127_v50  ;;  %v456_v50 = vld [vmem:[#allocation2 + $0x49] sm:$0xff] }
  0x35   : > { %2790 = vmatprep.subr.bf16.mxu0 %v3188_v1  ;;  %2645 = vmatpush3.bf16.msra.mxu1 %v3129_v52  ;;  %v1971_v52 = vld [vmem:[%s3782_s2] sm:$0xff] }
  0x36   : > { %2627 = vmatmul.mubr.bf16.gmra.mrb[8].mxu1 %v3126_v53  ;;  %2646 = vmatprep.subr.bf16.mxu1 %v3188_v1  ;;  %v3499_v53 = vld [vmem:[#allocation2 + $0x54] sm:$0xff] }
  0x37   : > { %2771 = vmatmul.mubr.bf16.gmra.mrb[8].mxu0 %v1008_v54  ;;  %2630 = vmatprep.mubr.msk.bf16.mxu1 %vm3189_vm0, %v3188_v1  ;;  %v3154_v54 = vld [vmem:[%s3781_s1 + $0x1b8] sm:$0xff]   ;;  %v1193_v58 = vpack.c.bf16 %v3499_v53, %v3492_v51 }
  0x38   : > { %2791 = vmatpush3.bf16.msra.mxu0 %v3130_v55  ;;  %2774 = vmatprep.mubr.msk.bf16.mxu0 %vm3189_vm0, %v3188_v1  ;;  %v1973_v55 = vld [vmem:[%s3782_s2 + $0x10] sm:$0xff] }
  0x39   : > { %2647 = vmatpush3.bf16.msra.mxu1 %v3132_v56  ;;  %2792 = vmatprep.subr.bf16.mxu0 %v3188_v1  ;;  %v3155_v56 = vld [vmem:[%s3781_s1 + $0xb8] sm:$0xff]  }
  0x3a   : > { %2648 = vmatprep.subr.bf16.mxu1 %v3188_v1  ;;  %1983 = vperm.xlu0 %3101, %v1971_v52   ;;  %v1549_v52 = vld [vmem:[#allocation2 + $0x35] sm:$0xff] }
  0x3b   : > { %1993 = vperm.xlu1 %3102, %v1973_v55   ;;  %v825_v55 = vpack.c.bf16 %v3613_v26, %v3581_v17 }
  0x3c   : > { %2793 = vmatpush3.bf16.msra.mxu0 %v3133_v57  ;;  %v461_v57 = vpack.c.bf16 %v456_v50, %v455_v49 }
  0x3d   : > { %2649 = vmatpush3.bf16.msra.mxu1 %v3134_v60  ;;  %2794 = vmatprep.subr.bf16.mxu0 %v3188_v1  ;;  %v1974_v60 = vld [vmem:[%s3782_s2 + $0x18] sm:$0xff] }
  0x3e   : > { %2631 = vmatmul.mubr.bf16.gmra.mrb[12].mxu1 %v3131_v61  ;;  %2650 = vmatprep.subr.bf16.mxu1 %v3188_v1  ;;  %v630_v61 = vld [vmem:[#allocation2 + $0x2] sm:$0xff] }
  0x3f   : > { %2775 = vmatmul.mubr.bf16.gmra.mrb[12].mxu0 %v1009_v62  ;;  %2634 = vmatprep.mubr.msk.bf16.mxu1 %vm3189_vm0, %v3188_v1  ;;  %v3524_v62 = vld [vmem:[#allocation2 + $0xa] sm:$0xff] }
  0x40   : > { %2778 = vmatprep.mubr.msk.bf16.mxu0 %vm3189_vm0, %v3188_v1  ;;  %2795 = vmatpush3.bf16.msra.mxu0 %v3135_v63  ;;  %v1975_v63 = vld [vmem:[%s3782_s2 + $0x20] sm:$0xff] }
  0x41   : > { %2651 = vmatpush3.bf16.msra.mxu1 %v3137_v0  ;;  %2796 = vmatprep.subr.bf16.mxu0 %v3188_v1  ;;  %v640_v0 = vpack.c.bf16 %v3524_v62, %v630_v61 }
  0x42   : > { %2652 = vmatprep.subr.bf16.mxu1 %v3188_v1  ;;  %1988 = vperm.xlu0 %3101, %v1972_v59   ;;  %v1552_v59 = vld [vmem:[#allocation2 + $0x4d] sm:$0xff] }
  0x43   : > { %1998 = vperm.xlu1 %3102, %v1974_v60   ;;  %v3177_v60 = vld [vmem:[%s3781_s1 + $0x228] sm:$0xff]  }
  0x44   : > { %2797 = vmatpush3.bf16.msra.mxu0 %v3138_v3  ;;  %v1372_v3 = vpack.c.bf16 %v3416_v19, %v3402_v11  ;;  %v3160_v11 = vld [vmem:[%s3781_s1 + $0xc8] sm:$0xff]   ;;  %v3161_v19 = vld [vmem:[%s3781_s1 + $0x1d8] sm:$0xff]  }
  0x45   : > { %2653 = vmatpush3.bf16.msra.mxu1 %v3139_v5  ;;  %2818 = vmatprep.subr.bf16.mxu0 %v3188_v1  ;;  %v3158_v5 = vld [vmem:[%s3781_s1 + $0xc0] sm:$0xff]  }
  0x46   : > { %2635 = vmatmul.mubr.bf16.gmra.mrb[16].mxu1 %v3136_v6  ;;  %2674 = vmatprep.subr.bf16.mxu1 %v3188_v1  ;;  %v3545_v6 = vld [vmem:[#allocation2 + $0x12] sm:$0xff] }
  0x47   : > { %2779 = vmatmul.mubr.bf16.gmra.mrb[16].mxu0 %v1010_v7  ;;  %2654 = vmatprep.mubr.msk.bf16.mxu1 %vm3189_vm0, %v3188_v1  ;;  %v3547_v7 = vld [vmem:[#allocation2 + $0x1a] sm:$0xff] }
  0x48   : > { %2798 = vmatprep.mubr.msk.bf16.mxu0 %vm3189_vm0, %v3188_v1  ;;  %2003 = vperm.xlu0 %3101, %v1975_v63   ;;  %v3178_v63 = vld [vmem:[%s3781_s1 + $0x230] sm:$0xff]  }
  0x49   : > { %2008 = vperm.xlu1 %3102, %v1976_v2   ;;  %v1553_v2 = vld [vmem:[#allocation2 + $0x55] sm:$0xff] }
  0x4c   : > { %2013 = vperm.xlu0 %3101, %v1977_v8   ;;  %v1735_v8 = vld [vmem:[#allocation2 + $0x4e] sm:$0xff] }
  0x4d   : > { %2018 = vperm.xlu1 %3102, %v1978_v10   ;;  %v1729_v10 = vld [vmem:[#allocation2 + $0x1e] sm:$0xff] }
  0x4e   : > { %2655 = vmatmul.mubr.bf16.vlgmr.msra.gmra.mrb[0].mxu1 %v457_v12  ;;  %v641_v12 = vpack.c.bf16 %v3547_v7, %v3545_v6 }
  0x4f   : > { %2799 = vmatmul.mubr.bf16.vlgmr.msra.gmra.mrb[0].mxu0 %v1189_v13  ;;  %2658 = vmatprep.mubr.msk.bf16.mxu1 %vm3189_vm0, %v3188_v1  ;;  %v1373_v13 = vpack.c.bf16 %v3438_v30, %v3420_v20  ;;  %v1980_v20 = vld [vmem:[%s3782_s2 + $0x48] sm:$0xff]  ;;  %v643_v30 = vpack.c.bf16 %v3615_v27, %v3613_v26 }
  0x50   : > { %2819 = vmatpush3.bf16.msra.mxu0 %v3140_v14  ;;  %2802 = vmatprep.mubr.msk.bf16.mxu0 %vm3189_vm0, %v3188_v1  ;;  %v3159_v14 = vld [vmem:[%s3781_s1 + $0x1d0] sm:$0xff]  }
  0x51   : > { %2820 = vmatprep.subr.bf16.mxu0 %v3188_v1  ;;  %2675 = vmatpush3.bf16.msra.mxu1 %v3142_v15  ;;  %v3162_v15 = vld [vmem:[%s3781_s1 + $0xd0] sm:$0xff]  }
  0x52   : > { %2676 = vmatprep.subr.bf16.mxu1 %v3188_v1  ;;  %2023 = vperm.xlu0 %3101, %v1979_v18  }
  0x53   : > { %2028 = vperm.xlu1 %3102, %v1980_v20   ;;  %v1733_v20 = vld [vmem:[#allocation2 + $0x3e] sm:$0xff] }
  0x54   : > { %2821 = vmatpush3.bf16.msra.mxu0 %v3141_v16  ;;  %v3579_v16 = vld [vmem:[#allocation2 + $0x22] sm:$0xff] }
  0x55   : > { %2822 = vmatprep.subr.bf16.mxu0 %v3188_v1  ;;  %2677 = vmatpush3.bf16.msra.mxu1 %v3144_v21  ;;  %v3163_v21 = vld [vmem:[%s3781_s1 + $0xd8] sm:$0xff]   ;;  %v824_v49 = vpack.c.bf16 %v3579_v16, %v3547_v7  ;;  %v1734_v7 = vld [vmem:[#allocation2 + $0x46] sm:$0xff] }
  0x56   : > { %2659 = vmatmul.mubr.bf16.gmra.mrb[4].mxu1 %v458_v22  ;;  %2678 = vmatprep.subr.bf16.mxu1 %v3188_v1  ;;  %v642_v22 = vpack.c.bf16 %v3581_v17, %v3579_v16  ;;  %v1731_v16 = vld [vmem:[#allocation2 + $0x2e] sm:$0xff] }
  0x57   : > { %2803 = vmatmul.mubr.bf16.gmra.mrb[4].mxu0 %v1190_v23  ;;  %2662 = vmatprep.mubr.msk.bf16.mxu1 %vm3189_vm0, %v3188_v1  ;;  %v1374_v23 = vpack.c.bf16 %v3466_v41, %v3442_v31  ;;  %v1375_v31 = vpack.c.bf16 %v3492_v51, %v3470_v42  ;;  %v1545_v41 = vld [vmem:[#allocation2 + $0x15] sm:$0xff]  ;;  %v1546_v42 = vld [vmem:[#allocation2 + $0x1d] sm:$0xff] }
  0x58   : > { %2823 = vmatpush3.bf16.msra.mxu0 %v3143_v25  ;;  %2806 = vmatprep.mubr.msk.bf16.mxu0 %vm3189_vm0, %v3188_v1  ;;  %v3165_v25 = vld [vmem:[%s3781_s1 + $0xe0] sm:$0xff]   ;;  %v3174_v51 = vld [vmem:[%s3781_s1 + $0x210] sm:$0xff]  }
  0x59   : > { %2824 = vmatprep.subr.bf16.mxu0 %v3188_v1  ;;  %2679 = vmatpush3.bf16.msra.mxu1 %v3146_v28  ;;  %v3166_v28 = vld [vmem:[%s3781_s1 + $0x1e8] sm:$0xff]  }
  0x5a   : > { %2680 = vmatprep.subr.bf16.mxu1 %v3188_v1 }
  0x5c   : > { %2825 = vmatpush3.bf16.msra.mxu0 %v3145_v32  ;;  %v3168_v32 = vld [vmem:[%s3781_s1 + $0x1f0] sm:$0xff]  }
  0x5d   : > { %2826 = vmatprep.subr.bf16.mxu0 %v3188_v1  ;;  %2681 = vmatpush3.bf16.msra.mxu1 %v3147_v33  ;;  %v3169_v33 = vld [vmem:[%s3781_s1 + $0xf0] sm:$0xff]  }
  0x5e   : > { %2663 = vmatmul.mubr.bf16.gmra.mrb[8].mxu1 %v459_v34  ;;  %2682 = vmatprep.subr.bf16.mxu1 %v3188_v1  ;;  %v3641_v34 = vld [vmem:[#allocation2 + $0x42] sm:$0xff] }
  0x5f   : > { %2807 = vmatmul.mubr.bf16.gmra.mrb[8].mxu0 %v1191_v36  ;;  %2666 = vmatprep.mubr.msk.bf16.mxu1 %vm3189_vm0, %v3188_v1  ;;  %v1371_v36 = vld [vmem:[#allocation2 + $0x5c] sm:$0xff]  ;;  %v644_v39 = vpack.c.bf16 %v3643_v35, %v3641_v34  ;;  %v826_v61 = vpack.c.bf16 %v3641_v34, %v3615_v27 }
  0x60   : > { %2827 = vmatpush3.bf16.msra.mxu0 %v3148_v37  ;;  %2810 = vmatprep.mubr.msk.bf16.mxu0 %vm3189_vm0, %v3188_v1  ;;  %v3170_v37 = vld [vmem:[%s3781_s1 + $0x1f8] sm:$0xff]   ;;  %v1376_v40 = vpack.c.bf16 %v1371_v36, %v3499_v53 }
  0x61   : > { %2683 = vmatpush3.bf16.msra.mxu1 %v3149_v38  ;;  %2828 = vmatprep.subr.bf16.mxu0 %v3188_v1  ;;  %v3171_v38 = vld [vmem:[%s3781_s1 + $0xf8] sm:$0xff]  }
  0x62   : > { %2684 = vmatprep.subr.bf16.mxu1 %v3188_v1  ;;  %v1550_v53 = vld [vmem:[#allocation2 + $0x3d] sm:$0xff] }
  0x64   : > { %2829 = vmatpush3.bf16.msra.mxu0 %v3150_v43  ;;  %v823_v43 = vpack.c.bf16 %v3545_v6, %v3524_v62 }
  0x65   : > { %2685 = vmatpush3.bf16.msra.mxu1 %v3151_v44  ;;  %2830 = vmatprep.subr.bf16.mxu0 %v3188_v1  ;;  %v1555_v44 = vpack.c.bf16 %v1546_v42, %v1545_v41 }
  0x66   : > { %2667 = vmatmul.mubr.bf16.gmra.mrb[12].mxu1 %v460_v45  ;;  %2686 = vmatprep.subr.bf16.mxu1 %v3188_v1  ;;  %v3172_v45 = vld [vmem:[%s3781_s1 + $0x200] sm:$0xff]  }
  0x67   : > { %2811 = vmatmul.mubr.bf16.gmra.mrb[12].mxu0 %v1192_v46  ;;  %2670 = vmatprep.mubr.msk.bf16.mxu1 %vm3189_vm0, %v3188_v1  ;;  %v3173_v46 = vld [vmem:[%s3781_s1 + $0x208] sm:$0xff]  }
  0x68   : > { %2814 = vmatprep.mubr.msk.bf16.mxu0 %vm3189_vm0, %v3188_v1  ;;  %2831 = vmatpush3.bf16.msra.mxu0 %v3152_v47  ;;  %v1547_v47 = vld [vmem:[#allocation2 + $0x25] sm:$0xff] }
  0x69   : > { %2687 = vmatpush3.bf16.msra.mxu1 %v3153_v48  ;;  %2832 = vmatprep.subr.bf16.mxu0 %v3188_v1  ;;  %v1548_v48 = vld [vmem:[#allocation2 + $0x2d] sm:$0xff] }
  0x6a   : > { %2688 = vmatprep.subr.bf16.mxu1 %v3188_v1  ;;  %v1556_v50 = vpack.c.bf16 %v1548_v48, %v1547_v47 }
  0x6c   : > { %2833 = vmatpush3.bf16.msra.mxu0 %v3154_v54  ;;  %v3175_v54 = vld [vmem:[%s3781_s1 + $0x218] sm:$0xff]  }
  0x6d   : > { %2689 = vmatpush3.bf16.msra.mxu1 %v3155_v56  ;;  %2854 = vmatprep.subr.bf16.mxu0 %v3188_v1  ;;  %v1557_v56 = vpack.c.bf16 %v1550_v53, %v1549_v52 }
  0x6e   : > { %2671 = vmatmul.mubr.bf16.gmra.mrb[16].mxu1 %v461_v57  ;;  %2710 = vmatprep.subr.bf16.mxu1 %v3188_v1  ;;  %v3176_v57 = vld [vmem:[%s3781_s1 + $0x220] sm:$0xff]  }
  0x6f   : > { %2815 = vmatmul.mubr.bf16.gmra.mrb[16].mxu0 %v1193_v58  ;;  %2690 = vmatprep.mubr.msk.bf16.mxu1 %vm3189_vm0, %v3188_v1  ;;  %v1551_v58 = vld [vmem:[#allocation2 + $0x45] sm:$0xff] }
  0x70   : > { %2834 = vmatprep.mubr.msk.bf16.mxu0 %vm3189_vm0, %v3188_v1  ;;  %v1558_v62 = vpack.c.bf16 %v1552_v59, %v1551_v58 }
  0x76   : > { %2691 = vmatmul.mubr.bf16.vlgmr.msra.gmra.mrb[0].mxu1 %v640_v0  ;;  %v822_v0 = vld [vmem:[#allocation2 + $0x52] sm:$0xff] }
  0x77   : > { %2835 = vmatmul.mubr.bf16.vlgmr.msra.gmra.mrb[0].mxu0 %v1372_v3  ;;  %2694 = vmatprep.mubr.msk.bf16.mxu1 %vm3189_vm0, %v3188_v1  ;;  %v1554_v3 = vld [vmem:[#allocation2 + $0x5d] sm:$0xff] }
  0x78   : > { %2855 = vmatpush3.bf16.msra.mxu0 %v3156_v4  ;;  %2838 = vmatprep.mubr.msk.bf16.mxu0 %vm3189_vm0, %v3188_v1  ;;  %v3179_v4 = vld [vmem:[%s3781_s1 + $0x238] sm:$0xff]   ;;  %v1559_v6 = vpack.c.bf16 %v1554_v3, %v1553_v2 }
  0x79   : > { %2856 = vmatprep.subr.bf16.mxu0 %v3188_v1  ;;  %2711 = vmatpush3.bf16.msra.mxu1 %v3158_v5  ;;  %v827_v5 = vpack.c.bf16 %v822_v0, %v3643_v35 }
  0x7a   : > { %2712 = vmatprep.subr.bf16.mxu1 %v3188_v1 }
  0x7c   : > { %2857 = vmatpush3.bf16.msra.mxu0 %v3157_v9  ;;  %v1728_v9 = vld [vmem:[#allocation2 + $0x16] sm:$0xff] }
  0x7d   : > { %2858 = vmatprep.subr.bf16.mxu0 %v3188_v1  ;;  %2713 = vmatpush3.bf16.msra.mxu1 %v3160_v11  ;;  %v1741_v11 = vpack.c.bf16 %v1735_v8, %v1734_v7 }
  0x7e   : > { %2695 = vmatmul.mubr.bf16.gmra.mrb[4].mxu1 %v641_v12  ;;  %2714 = vmatprep.subr.bf16.mxu1 %v3188_v1  ;;  %v1738_v12 = vpack.c.bf16 %v1729_v10, %v1728_v9 }
  0x7f   : > { %2839 = vmatmul.mubr.bf16.gmra.mrb[4].mxu0 %v1373_v13  ;;  %2698 = vmatprep.mubr.msk.bf16.mxu1 %vm3189_vm0, %v3188_v1  ;;  %v1736_v13 = vld [vmem:[#allocation2 + $0x56] sm:$0xff] }
  0x80   : > { %2859 = vmatpush3.bf16.msra.mxu0 %v3159_v14  ;;  %2842 = vmatprep.mubr.msk.bf16.mxu0 %vm3189_vm0, %v3188_v1  ;;  %v1737_v14 = vld [vmem:[#allocation2 + $0x5e] sm:$0xff] }
  0x81   : > { %2860 = vmatprep.subr.bf16.mxu0 %v3188_v1  ;;  %2715 = vmatpush3.bf16.msra.mxu1 %v3162_v15  ;;  %v1730_v15 = vld [vmem:[#allocation2 + $0x26] sm:$0xff]  ;;  %v1742_v17 = vpack.c.bf16 %v1737_v14, %v1736_v13 }
  0x82   : > { %2716 = vmatprep.subr.bf16.mxu1 %v3188_v1  ;;  %v1739_v18 = vpack.c.bf16 %v1731_v16, %v1730_v15 }
  0x84   : > { %2861 = vmatpush3.bf16.msra.mxu0 %v3161_v19  ;;  %v1732_v19 = vld [vmem:[#allocation2 + $0x36] sm:$0xff] }
  0x85   : > { %2862 = vmatprep.subr.bf16.mxu0 %v3188_v1  ;;  %2717 = vmatpush3.bf16.msra.mxu1 %v3163_v21  ;;  %v1740_v21 = vpack.c.bf16 %v1733_v20, %v1732_v19 }
  0x86   : > { %2699 = vmatmul.mubr.bf16.gmra.mrb[8].mxu1 %v642_v22  ;;  %2718 = vmatprep.subr.bf16.mxu1 %v3188_v1 }
  0x87   : > { %2843 = vmatmul.mubr.bf16.gmra.mrb[8].mxu0 %v1374_v23  ;;  %2702 = vmatprep.mubr.msk.bf16.mxu1 %vm3189_vm0, %v3188_v1 }
  0x88   : > { %2863 = vmatpush3.bf16.msra.mxu0 %v3164_v24  ;;  %2846 = vmatprep.mubr.msk.bf16.mxu0 %vm3189_vm0, %v3188_v1 }
  0x89   : > { %2719 = vmatpush3.bf16.msra.mxu1 %v3165_v25  ;;  %2864 = vmatprep.subr.bf16.mxu0 %v3188_v1 }
  0x8a   : > { %2720 = vmatprep.subr.bf16.mxu1 %v3188_v1 }
  0x8c   : > { %2865 = vmatpush3.bf16.msra.mxu0 %v3166_v28 }
  0x8d   : > { %2721 = vmatpush3.bf16.msra.mxu1 %v3167_v29  ;;  %2866 = vmatprep.subr.bf16.mxu0 %v3188_v1 }
  0x8e   : > { %2703 = vmatmul.mubr.bf16.gmra.mrb[12].mxu1 %v643_v30  ;;  %2722 = vmatprep.subr.bf16.mxu1 %v3188_v1 }
  0x8f   : > { %2847 = vmatmul.mubr.bf16.gmra.mrb[12].mxu0 %v1375_v31  ;;  %2706 = vmatprep.mubr.msk.bf16.mxu1 %vm3189_vm0, %v3188_v1 }
  0x90   : > { %2850 = vmatprep.mubr.msk.bf16.mxu0 %vm3189_vm0, %v3188_v1  ;;  %2867 = vmatpush3.bf16.msra.mxu0 %v3168_v32 }
  0x91   : > { %2723 = vmatpush3.bf16.msra.mxu1 %v3169_v33  ;;  %2868 = vmatprep.subr.bf16.mxu0 %v3188_v1 }
  0x92   : > { %2724 = vmatprep.subr.bf16.mxu1 %v3188_v1 }
  0x94   : > { %2869 = vmatpush3.bf16.msra.mxu0 %v3170_v37 }
  0x95   : > { %2725 = vmatpush3.bf16.msra.mxu1 %v3171_v38  ;;  %2890 = vmatprep.subr.bf16.mxu0 %v3188_v1 }
  0x96   : > { %2707 = vmatmul.mubr.bf16.gmra.mrb[16].mxu1 %v644_v39  ;;  %2926 = vmatprep.subr.bf16.mxu1 %v3188_v1 }
  0x97   : > { %2851 = vmatmul.mubr.bf16.gmra.mrb[16].mxu0 %v1376_v40  ;;  %2726 = vmatprep.mubr.msk.bf16.mxu1 %vm3189_vm0, %v3188_v1 }
  0x98   : > { %2870 = vmatprep.mubr.msk.bf16.mxu0 %vm3189_vm0, %v3188_v1 }
  0x9e   : > { %2727 = vmatmul.mubr.bf16.vlgmr.msra.gmra.mrb[0].mxu1 %v823_v43 }
  0x9f   : > { %2871 = vmatmul.mubr.bf16.vlgmr.msra.gmra.mrb[0].mxu0 %v1555_v44  ;;  %2730 = vmatprep.mubr.msk.bf16.mxu1 %vm3189_vm0, %v3188_v1 }
  0xa0   : > { %2891 = vmatpush3.bf16.msra.mxu0 %v3172_v45  ;;  %2874 = vmatprep.mubr.msk.bf16.mxu0 %vm3189_vm0, %v3188_v1 }
  0xa1   : > { %2892 = vmatprep.subr.bf16.mxu0 %v3188_v1  ;;  %2934 = vmatpush3.bf16.msra.mxu1 %v3172_v45 }
  0xa2   : > { %2927 = vmatprep.subr.bf16.mxu1 %v3188_v1 }
  0xa4   : > { %2893 = vmatpush3.bf16.msra.mxu0 %v3173_v46 }
  0xa5   : > { %2894 = vmatprep.subr.bf16.mxu0 %v3188_v1  ;;  %2935 = vmatpush3.bf16.msra.mxu1 %v3173_v46 }
  0xa6   : > { %2731 = vmatmul.mubr.bf16.gmra.mrb[4].mxu1 %v824_v49  ;;  %2928 = vmatprep.subr.bf16.mxu1 %v3188_v1 }
  0xa7   : > { %2875 = vmatmul.mubr.bf16.gmra.mrb[4].mxu0 %v1556_v50  ;;  %2734 = vmatprep.mubr.msk.bf16.mxu1 %vm3189_vm0, %v3188_v1 }
  0xa8   : > { %2895 = vmatpush3.bf16.msra.mxu0 %v3174_v51  ;;  %2878 = vmatprep.mubr.msk.bf16.mxu0 %vm3189_vm0, %v3188_v1 }
  0xa9   : > { %2896 = vmatprep.subr.bf16.mxu0 %v3188_v1  ;;  %2936 = vmatpush3.bf16.msra.mxu1 %v3174_v51 }
  0xaa   : > { %2929 = vmatprep.subr.bf16.mxu1 %v3188_v1 }
  0xac   : > { %2897 = vmatpush3.bf16.msra.mxu0 %v3175_v54 }
  0xad   : > { %2898 = vmatprep.subr.bf16.mxu0 %v3188_v1  ;;  %2937 = vmatpush3.bf16.msra.mxu1 %v3175_v54 }
  0xae   : > { %2735 = vmatmul.mubr.bf16.gmra.mrb[8].mxu1 %v825_v55  ;;  %2930 = vmatprep.subr.bf16.mxu1 %v3188_v1 }
  0xaf   : > { %2879 = vmatmul.mubr.bf16.gmra.mrb[8].mxu0 %v1557_v56  ;;  %2738 = vmatprep.mubr.msk.bf16.mxu1 %vm3189_vm0, %v3188_v1 }
  0xb0   : > { %2899 = vmatpush3.bf16.msra.mxu0 %v3176_v57  ;;  %2882 = vmatprep.mubr.msk.bf16.mxu0 %vm3189_vm0, %v3188_v1 }
  0xb1   : > { %2938 = vmatpush3.bf16.msra.mxu1 %v3176_v57  ;;  %2900 = vmatprep.subr.bf16.mxu0 %v3188_v1 }
  0xb2   : > { %2931 = vmatprep.subr.bf16.mxu1 %v3188_v1 }
  0xb4   : > { %2901 = vmatpush3.bf16.msra.mxu0 %v3177_v60 }
  0xb5   : > { %2939 = vmatpush3.bf16.msra.mxu1 %v3177_v60  ;;  %2902 = vmatprep.subr.bf16.mxu0 %v3188_v1 }
  0xb6   : > { %2739 = vmatmul.mubr.bf16.gmra.mrb[12].mxu1 %v826_v61  ;;  %2932 = vmatprep.subr.bf16.mxu1 %v3188_v1 }
  0xb7   : > { %2883 = vmatmul.mubr.bf16.gmra.mrb[12].mxu0 %v1558_v62  ;;  %2742 = vmatprep.mubr.msk.bf16.mxu1 %vm3189_vm0, %v3188_v1 }
  0xb8   : > { %2886 = vmatprep.mubr.msk.bf16.mxu0 %vm3189_vm0, %v3188_v1  ;;  %2903 = vmatpush3.bf16.msra.mxu0 %v3178_v63 }
  0xb9   : > { %2940 = vmatpush3.bf16.msra.mxu1 %v3178_v63  ;;  %2904 = vmatprep.subr.bf16.mxu0 %v3188_v1  ;;  %v1984_v53 = vpop.permute.xlu0 %1983 }
  0xba   : > { %2933 = vmatprep.subr.bf16.mxu1 %v3188_v1  ;;  %v1994_v54 = vpop.permute.xlu1 %1993 }
  0xbc   : > { %2905 = vmatpush3.bf16.msra.mxu0 %v3179_v4 }
  0xbd   : > { %2941 = vmatpush3.bf16.msra.mxu1 %v3179_v4 }
  0xbe   : > { %2743 = vmatmul.mubr.bf16.gmra.mrb[16].mxu1 %v827_v5 }
  0xbf   : > { %2887 = vmatmul.mubr.bf16.gmra.mrb[16].mxu0 %v1559_v6  ;;  %2918 = vmatprep.mubr.msk.bf16.mxu1 %vm3189_vm0, %v3188_v1 }
  0xc0   : > { %2906 = vmatprep.mubr.msk.bf16.mxu0 %vm3189_vm0, %v3188_v1 }
  0xc1   : > { %v1989_v5 = vpop.permute.xlu0 %1988 }
  0xc6   : > { %2919 = vmatmul.mubr.bf16.vlgmr.msra.gmra.mrb[20].mxu1 %v1741_v11  ;;  %v1999_v11 = vpop.permute.xlu1 %1998 }
  0xc7   : > { %2907 = vmatmul.mubr.bf16.vlgmr.msra.gmra.mrb[0].mxu0 %v1738_v12  ;;  %2922 = vmatprep.mubr.msk.bf16.mxu1 %vm3189_vm0, %v3188_v1 }
  0xc8   : > { %2910 = vmatprep.mubr.msk.bf16.mxu0 %vm3189_vm0, %v3188_v1 }
  0xce   : > { %2923 = vmatmul.mubr.bf16.gmra.mrb[24].mxu1 %v1742_v17 }
  0xcf   : > { %2911 = vmatmul.mubr.bf16.gmra.mrb[4].mxu0 %v1739_v18 }
  0xd0   : > { %2914 = vmatprep.mubr.msk.bf16.mxu0 %vm3189_vm0, %v3188_v1 }
  0xd7   : > { %2915 = vmatmul.mubr.bf16.gmra.mrb[8].mxu0 %v1740_v21 }
 0x171   : > { %v927_v22 = vpop.f32.mrb[0].mxu1 }
 0x172   : > { %v2728_v23 = vpop.f32.mrb[1].mxu1 }
 0x173   : > { %v930_v24 = vpop.f32.mrb[2].mxu1 }
 0x174   : > { %v2729_v25 = vpop.f32.mrb[3].mxu1 }
 0x179   : > { %v935_v26 = vpop.f32.mrb[4].mxu1 }
 0x17a   : > { %v2732_v27 = vpop.f32.mrb[5].mxu1 }
 0x17b   : > { %v3737_v28 = vpop.f32.mrb[6].mxu1 }
 0x17c   : > { %v2733_v29 = vpop.f32.mrb[7].mxu1 }
 0x181   : > { %v3739_v30 = vpop.f32.mrb[8].mxu1 }
 0x182   : > { %v2736_v31 = vpop.f32.mrb[9].mxu1 }
 0x183   : > { %v3741_v32 = vpop.f32.mrb[10].mxu1 }
 0x184   : > { %v2737_v33 = vpop.f32.mrb[11].mxu1 }
 0x189   : > { %v951_v1 = vpop.f32.mrb[12].mxu1 }
 0x18a   : > { %v1683_v34 = vpop.f32.mrb[12].mxu0  ;;  %v2740_v35 = vpop.f32.mrb[13].mxu1 }
 0x18b   : > { %v2948_v36 = vadd.f32 %v1683_v34, %v951_v1  ;;  %v2884_v37 = vpop.f32.mrb[13].mxu0  ;;  %v954_v38 = vpop.f32.mrb[14].mxu1 }
 0x18c   : > { %v1686_v39 = vpop.f32.mrb[14].mxu0  ;;  %v2741_v40 = vpop.f32.mrb[15].mxu1 }
 0x18d   : > { %v2950_v41 = vadd.f32 %v1686_v39, %v954_v38  ;;  %v2885_v42 = vpop.f32.mrb[15].mxu0  ;;  %v2004_v38 = vpop.permute.xlu0 %2003 }
 0x191   : > { %v959_v43 = vpop.f32.mrb[16].mxu1 }
 0x192   : > { %v1691_v44 = vpop.f32.mrb[16].mxu0  ;;  %v2744_v45 = vpop.f32.mrb[17].mxu1 }
 0x193   : > { %v2952_v46 = vadd.f32 %v1691_v44, %v959_v43  ;;  %v2888_v47 = vpop.f32.mrb[17].mxu0  ;;  %v962_v48 = vpop.f32.mrb[18].mxu1 }
 0x194   : > { %v1694_v49 = vpop.f32.mrb[18].mxu0  ;;  %v2745_v50 = vpop.f32.mrb[19].mxu1 }
 0x195   : > { %v2954_v51 = vadd.f32 %v1694_v49, %v962_v48  ;;  %v2889_v52 = vpop.f32.mrb[19].mxu0 }
 0x199   : > { %v1866_v55 = vpop.f32.mrb[20].mxu1 }
 0x19a   : > { %v1842_v56 = vpop.f32.mrb[0].mxu0  ;;  %v3744_v57 = vadd.f32 %v2948_v36, %v1866_v55  ;;  %v2920_v58 = vpop.f32.mrb[21].mxu1 }
 0x19b   : > { %v2942_v59 = vadd.f32 %v1842_v56, %v927_v22  ;;  %v2908_v60 = vpop.f32.mrb[1].mxu0  ;;  %v1869_v61 = vpop.f32.mrb[22].mxu1 }
 0x19c   : > { %v1845_v62 = vpop.f32.mrb[2].mxu0  ;;  %v3746_v63 = vadd.f32 %v2950_v41, %v1869_v61  ;;  %v2921_v0 = vpop.f32.mrb[23].mxu1  ;;  %v2063_v56 = vmul.f32 %v3744_v57, %v3744_v57 }
 0x19d   : > { %v2057_v2 = vmul.f32 %v2942_v59, %v2942_v59  ;;  %v2943_v3 = vadd.f32 %v1845_v62, %v930_v24  ;;  %v2909_v4 = vpop.f32.mrb[3].mxu0  ;;  %v2031_v7 = vmul.f32 %v2942_v59, %v1984_v53  ;;  %v2009_v41 = vpop.permute.xlu1 %2008 }
 0x19e   : > { %v2469_v6 = vpack.c.bf16 %v3746_v63, %v3744_v57  ;;  %v2064_v62 = vmul.f32 %v3746_v63, %v3746_v63 }
 0x19f   : > { %v2454_v8 = vpack.c.bf16 %v2943_v3, %v2942_v59  ;;  %v2032_v9 = vmul.f32 %v2943_v3, %v1989_v5  ;;  %v2058_v10 = vmul.f32 %v2943_v3, %v2943_v3  ;;  %v2067_v12 = vmul.f32 %v2057_v2, %v1984_v53 }
 0x1a0   : > { %2483 = vst [vmem:[%s3751_s7 + $0x18] sm:$0xff] %v2469_v6  }
 0x1a1   : > { %2455 = vst [vmem:[%s3751_s7] sm:$0xff] %v2454_v8   ;;  %v2041_v13 = vadd.f32 %v2032_v9, %v2031_v7  ;;  %v2068_v14 = vmul.f32 %v2058_v10, %v1989_v5  ;;  %v1874_v15 = vpop.f32.mrb[24].mxu1  ;;  %v2019_v58 = vpop.permute.xlu1 %2018 }
 0x1a2   : > { %v1850_v16 = vpop.f32.mrb[4].mxu0  ;;  %v2953_v17 = vadd.f32 %v2952_v46, %v1874_v15  ;;  %v2924_v18 = vpop.f32.mrb[25].mxu1  ;;  %v2038_v2 = vmul.f32 %v3746_v63, %v2019_v58  ;;  %v2074_v10 = vmul.f32 %v2064_v62, %v2019_v58 }
 0x1a3   : > { %v2077_v19 = vadd.f32 %v2068_v14, %v2067_v12  ;;  %v2944_v20 = vadd.f32 %v1850_v16, %v935_v26  ;;  %v2912_v21 = vpop.f32.mrb[5].mxu0  ;;  %v1877_v22 = vpop.f32.mrb[26].mxu1 }
 0x1a4   : > { %v1853_v23 = vpop.f32.mrb[6].mxu0  ;;  %v2955_v24 = vadd.f32 %v2954_v51, %v1877_v22  ;;  %v2925_v25 = vpop.f32.mrb[27].mxu1  ;;  %v2065_v5 = vmul.f32 %v2953_v17, %v2953_v17 }
 0x1a5   : > { %v2033_v27 = vmul.f32 %v2944_v20, %v1994_v54  ;;  %v2059_v29 = vmul.f32 %v2944_v20, %v2944_v20  ;;  %v2945_v31 = vadd.f32 %v1853_v23, %v3737_v28  ;;  %v2913_v33 = vpop.f32.mrb[7].mxu0  ;;  %v2014_v51 = vpop.permute.xlu0 %2013 }
 0x1a6   : > { %v2474_v1 = vpack.c.bf16 %v2955_v24, %v2953_v17  ;;  %v2073_v4 = vmul.f32 %v2063_v56, %v2014_v51  ;;  %v2029_v6 = vpop.permute.xlu1 %2028 }
 0x1a7   : > { %v2042_v34 = vadd.f32 %v2041_v13, %v2033_v27  ;;  %v2069_v35 = vmul.f32 %v2059_v29, %v1994_v54  ;;  %v2459_v36 = vpack.c.bf16 %v2945_v31, %v2944_v20  ;;  %v2034_v37 = vmul.f32 %v2945_v31, %v1999_v11 }
 0x1a8   : > { %v2060_v39 = vmul.f32 %v2945_v31, %v2945_v31  ;;  %2484 = vst [vmem:[%s3751_s7 + $0x20] sm:$0xff] %v2474_v1   ;;  %v2040_v12 = vmul.f32 %v2955_v24, %v2029_v6 }
 0x1a9   : > { %v2078_v26 = vadd.f32 %v2077_v19, %v2069_v35  ;;  %2481 = vst [vmem:[%s3751_s7 + $0x8] sm:$0xff] %v2459_v36   ;;  %v2043_v40 = vadd.f32 %v2042_v34, %v2034_v37 }
 0x1aa   : > { %v2070_v42 = vmul.f32 %v2060_v39, %v1999_v11  ;;  %v1858_v43 = vpop.f32.mrb[8].mxu0  ;;  %v2066_v11 = vmul.f32 %v2955_v24, %v2955_v24 }
 0x1ab   : > { %v2946_v44 = vadd.f32 %v1858_v43, %v3739_v30  ;;  %v2916_v45 = vpop.f32.mrb[9].mxu0  ;;  %v2037_v30 = vmul.f32 %v3744_v57, %v2014_v51 }
 0x1ac   : > { %v2079_v46 = vadd.f32 %v2078_v26, %v2070_v42  ;;  %v1861_v28 = vpop.f32.mrb[10].mxu0  ;;  %v2076_v18 = vmul.f32 %v2066_v11, %v2029_v6 }
 0x1ad   : > { %v2035_v47 = vmul.f32 %v2946_v44, %v2004_v38  ;;  %v2061_v48 = vmul.f32 %v2946_v44, %v2946_v44  ;;  %v2947_v49 = vadd.f32 %v1861_v28, %v3741_v32  ;;  %v2917_v50 = vpop.f32.mrb[11].mxu0  ;;  %v2024_v32 = vpop.permute.xlu0 %2023 }
 0x1ae   : > { %v2039_v8 = vmul.f32 %v2953_v17, %v2024_v32  ;;  %v2075_v14 = vmul.f32 %v2065_v5, %v2024_v32 }
 0x1af   : > { %v2044_v52 = vadd.f32 %v2043_v40, %v2035_v47  ;;  %v2071_v53 = vmul.f32 %v2061_v48, %v2004_v38  ;;  %v2464_v54 = vpack.c.bf16 %v2947_v49, %v2946_v44  ;;  %v2036_v55 = vmul.f32 %v2947_v49, %v2009_v41 }
 0x1b0   : > { %v2062_v59 = vmul.f32 %v2947_v49, %v2947_v49 }
 0x1b1   : > { %v2080_v60 = vadd.f32 %v2079_v46, %v2071_v53  ;;  %2482 = vst [vmem:[%s3751_s7 + $0x10] sm:$0xff] %v2464_v54   ;;  %v2045_v61 = vadd.f32 %v2044_v52, %v2036_v55 }
 0x1b2   : > { %v2072_v0 = vmul.f32 %v2062_v59, %v2009_v41 }
 0x1b3   : > { %v2046_v3 = vadd.f32 %v2045_v61, %v2037_v30 }
 0x1b4   : > { %v2081_v7 = vadd.f32 %v2080_v60, %v2072_v0 }
 0x1b5   : > { %v2047_v9 = vadd.f32 %v2046_v3, %v2038_v2 }
 0x1b6   : > { %v2082_v57 = vadd.f32 %v2081_v7, %v2073_v4 }
 0x1b7   : > { %v2048_v13 = vadd.f32 %v2047_v9, %v2039_v8 }
 0x1b8   : > { %v2083_v15 = vadd.f32 %v2082_v57, %v2074_v10 }
 0x1b9   : > { %v2049_v16 = vadd.f32 %v2048_v13, %v2040_v12 }
 0x1ba   : > { %v2084_v19 = vadd.f32 %v2083_v15, %v2075_v14 }
 0x1bb   : > { %v2050_v63 = vrot.slane %v2049_v16, 4 }
 0x1bc   : > { %v2085_v20 = vadd.f32 %v2084_v19, %v2076_v18 }
 0x1bd   : > { %v2051_v21 = vadd.f32 %v2050_v63, %v2049_v16 }
 0x1be   : > { %v2086_v22 = vrot.slane %v2085_v20, 4 }
 0x1bf   : > { %v2052_v23 = vrot.slane %v2051_v21, 2 }
 0x1c0   : > { %v2087_v25 = vadd.f32 %v2086_v22, %v2085_v20 }
 0x1c1   : > { %v2053_v17 = vadd.f32 %v2052_v23, %v2051_v21 }
 0x1c2   : > { %v2088_v27 = vrot.slane %v2087_v25, 2 }
 0x1c3   : > { %v2054_v29 = vrot.slane %v2053_v17, 1 }
 0x1c4   : > { %v2089_v24 = vadd.f32 %v2088_v27, %v2087_v25 }
 0x1c5   : > { %v2055_v31 = vadd.f32 %v2054_v29, %v2053_v17 }
 0x1c6   : > { %v2090_v33 = vrot.slane %v2089_v24, 1 }
 0x1c7   : > { %2056 = vst [vmem:[%s238_s9] sm:$0x1] %v2055_v31 }
 0x1c8   : > { %v2091_v1 = vadd.f32 %v2090_v33, %v2089_v24 }
 0x1ca   : > { %2092 = vst [vmem:[%s241_s12] sm:$0x1] %v2091_v1 }
 0x1cb PF: > { %s16_s18 = sadd.s32 1, %s3186_s18  }
 0x1cc   : > { %p13_p4 = scmp.ge.s32.totalorder %s16_s18, 4  }
 0x1ce   :  { %15 = sbr.rel (!%p13_p4) target bundleno = 1 (0x1), region = 94 }

</bundles_post_ra>
